<compile_context>
chip_gen: v5e
topology: v5e:2x2
jax: 0.10.0
libtpu: 0.0.40
codegen_flags: <defaults>
</compile_context>

<pallas_src>
import functools

import jax
import jax.numpy as jnp
import numpy as np
from jax.experimental import pallas as pl
from jax.experimental.pallas import tpu as pltpu

KSIZE = 7
PAD = 3


def _spatial_attention_kernel(w_ref, mask_ref, x_ref, o_ref, pad_ref,
                              *, H, W, lpad):
    # w_ref    : SMEM f32[99]                 98 BN-folded conv taps + BN bias
    # mask_ref : VMEM f32[7, H*W]             per-kw horizontal validity masks
    # x_ref    : VMEM (1, C, H*W)             lane-dense input block (one image)
    # o_ref    : VMEM (1, C, H*W)             lane-dense output block
    # pad_ref  : VMEM f32[2, lpad+H*W+3*W+3]  flat zero-padded avg / max maps
    HW = H * W
    xf = x_ref[0].astype(jnp.float32)                      # (C, HW)

    # Channel-wise mean / max on the lane-dense view (f32 accumulation).
    avg = jnp.mean(xf, axis=0, keepdims=True)              # (1, HW)
    mx = jnp.max(xf, axis=0, keepdims=True)                # (1, HW)

    # Flat zero-padded scratch: row 0 = avg map, row 1 = max map, stored at a
    # 128-aligned lane offset (unmasked stores).  The zero margins supply the
    # vertical (kh) zero padding of the 7x7 conv.
    pad_ref[...] = jnp.zeros_like(pad_ref)
    pad_ref[0:1, lpad:lpad + HW] = avg
    pad_ref[1:2, lpad:lpad + HW] = mx

    # 7x7 conv, 2 in-channels -> 1 out-channel, no bias (BN scale pre-folded),
    # entirely in the flat layout: each (kh, kw) tap is a static lane-shifted
    # slice of the padded buffer.  Horizontal out-of-range taps wrap into the
    # neighbouring row, so each per-kw partial sum is multiplied by a
    # precomputed column-validity mask (independent short accumulation chains).
    conv = jnp.zeros((1, HW), jnp.float32)
    for kw in range(KSIZE):
        dw = kw - PAD
        acc = jnp.zeros((1, HW), jnp.float32)
        for kh in range(KSIZE):
            dh = kh - PAD
            off = lpad + dh * W + dw
            sl = pad_ref[:, off:off + HW]                  # (2, HW)
            wa = w_ref[kh * KSIZE + kw]                    # avg-channel tap
            wm = w_ref[KSIZE * KSIZE + kh * KSIZE + kw]    # max-channel tap
            acc = acc + wa * sl[0:1, :] + wm * sl[1:2, :]
        if dw == 0:
            conv = conv + acc                              # centre column: all valid
        else:
            conv = conv + acc * mask_ref[kw:kw + 1, :]

    # Folded BatchNorm bias + sigmoid (EUP), then the single lane-dense
    # rescale that carries all the HBM traffic.
    sig = jax.nn.sigmoid(conv + w_ref[2 * KSIZE * KSIZE])  # (1, HW)
    o_ref[0] = (xf * sig).astype(o_ref.dtype)


def spatial_attention(x, conv_w, bn_gamma, bn_beta, bn_mean, bn_var, eps=1e-5):
    """x: (N, C, H, W); conv_w: (1, 2, 7, 7) [OIHW]; BN params: shape (1,)."""
    N, C, H, W = x.shape
    HW = H * W
    lpad = ((3 * W + 3 + 127) // 128) * 128      # lane-aligned left zero margin
    pad_w = lpad + HW + 3 * W + 3                # flat padded map width

    # Fold eval-mode BN (y = conv(x) * scale + bias) into the conv weights,
    # leaving a single bias scalar for the kernel.
    bn_scale = (bn_gamma / jnp.sqrt(bn_var + eps)).astype(jnp.float32)   # (1,)
    bn_bias = (bn_beta.astype(jnp.float32)
               - bn_mean.astype(jnp.float32) * bn_scale)                 # (1,)
    w_flat = (conv_w[0].astype(jnp.float32) * bn_scale[0]).reshape(-1)   # (98,)
    params = jnp.concatenate([w_flat, bn_bias])                          # (99,)

    # Per-kw column-validity masks (horizontal zero padding of the conv).
    col = jnp.tile(jnp.arange(W, dtype=jnp.int32), H)                    # (HW,)
    masks = jnp.stack(
        [(col + (kw - PAD) >= 0) & (col + (kw - PAD) < W)
         for kw in range(KSIZE)],
        axis=0).astype(jnp.float32)                                      # (7, HW)

    # Lane-dense layout: flatten spatial dims so the heavy elementwise rescale
    # streams with full 128-lane loads/stores.
    x_flat = x.reshape(N, C, HW)

    # Explicit VMEM budget: in/out double-buffered + f32 temp + masks + scratch.
    itemsize = np.dtype(x.dtype).itemsize
    block_bytes = C * HW * itemsize
    scratch_bytes = 2 * pad_w * 4
    mask_bytes = KSIZE * HW * 4
    needed = (4 * block_bytes + C * HW * 4 + 2 * mask_bytes
              + scratch_bytes + (2 << 20))
    vmem_limit = int(min(max(needed, 8 << 20), 64 << 20))
    # TODO(synk): for very large C*H*W blocks (v7x's 64 MiB VMEM), tile C or
    # switch to a two-pass (sig-map pass + C-tiled rescale pass) structure.

    out_flat = pl.pallas_call(
        functools.partial(_spatial_attention_kernel, H=H, W=W, lpad=lpad),
        out_shape=jax.ShapeDtypeStruct((N, C, HW), x.dtype),
        grid=(N,),
        in_specs=[
            pl.BlockSpec(memory_space=pltpu.MemorySpace.SMEM),
            pl.BlockSpec((KSIZE, HW), lambda n: (0, 0)),
            pl.BlockSpec((1, C, HW), lambda n: (n, 0, 0)),
        ],
        out_specs=pl.BlockSpec((1, C, HW), lambda n: (n, 0, 0)),
        scratch_shapes=[
            pltpu.VMEM((2, pad_w), jnp.float32),
        ],
        compiler_params=pltpu.CompilerParams(
            dimension_semantics=("parallel",),
            vmem_limit_bytes=vmem_limit,
        ),
    )(params, masks, x_flat)
    return out_flat.reshape(N, C, H, W)


def spatial_attention_reference(x, conv_w, bn_gamma, bn_beta, bn_mean, bn_var,
                                eps=1e-5):
    avg = jnp.mean(x, axis=1, keepdims=True)
    mx = jnp.max(x, axis=1, keepdims=True)
    out = jnp.concatenate([avg, mx], axis=1)
    out = jax.lax.conv_general_dilated(
        out, conv_w, window_strides=(1, 1), padding=[(PAD, PAD), (PAD, PAD)],
        dimension_numbers=("NCHW", "OIHW", "NCHW"))
    g = bn_gamma.reshape(1, -1, 1, 1)
    b = bn_beta.reshape(1, -1, 1, 1)
    m = bn_mean.reshape(1, -1, 1, 1)
    v = bn_var.reshape(1, -1, 1, 1)
    out = (out - m) / jnp.sqrt(v + eps) * g + b
    return x * jax.nn.sigmoid(out)


if __name__ == "__main__":
    key = jax.random.PRNGKey(0)
    kx, kw = jax.random.split(key)

    N, C, H, W = 2, 4, 16, 16
    x = jax.random.normal(kx, (N, C, H, W), dtype=jnp.float32)

    # Deterministic Conv2d(2, 1, kernel_size=7, bias=False) init
    # (kaiming-uniform-style bound, as PyTorch does).
    fan_in = 2 * KSIZE * KSIZE
    bound = 1.0 / np.sqrt(fan_in)
    conv_w = jax.random.uniform(kw, (1, 2, KSIZE, KSIZE), jnp.float32,
                                minval=-bound, maxval=bound)

    # BatchNorm2d(1) default init: gamma=1, beta=0, running_mean=0, running_var=1
    bn_gamma = jnp.ones((1,), jnp.float32)
    bn_beta = jnp.zeros((1,), jnp.float32)
    bn_mean = jnp.zeros((1,), jnp.float32)
    bn_var = jnp.ones((1,), jnp.float32)

    out = spatial_attention(x, conv_w, bn_gamma, bn_beta, bn_mean, bn_var)
    out = jax.block_until_ready(out)

    ref = spatial_attention_reference(x, conv_w, bn_gamma, bn_beta, bn_mean,
                                      bn_var)
    np.testing.assert_allclose(np.asarray(out), np.asarray(ref),
                               rtol=1e-5, atol=1e-5)
    print("KERNEL_OK")
</pallas_src>

<mosaic_0001>
module attributes {stable_mosaic.version = 11 : i64} {
  func.func @_spatial_attention_kernel(%arg0: i32, %arg1: memref<99xf32, #tpu.memory_space<smem>>, %arg2: memref<7x256xf32, #tpu.memory_space<vmem>>, %arg3: memref<1x4x256xf32, #tpu.memory_space<vmem>>, %arg4: memref<1x4x256xf32, #tpu.memory_space<vmem>>, %arg5: memref<2x435xf32, #tpu.memory_space<vmem>>) attributes {dimension_semantics = [#tpu.dimension_semantics<parallel>], iteration_bounds = array<i64: 2>, scalar_prefetch = 0 : i64, scratch_operands = 1 : i64, tpu.core_type = #tpu.core_type<tc>, window_params = [{transform_indices = @transform_0, window_bounds = array<i64: 99>}, {pipeline_mode = #tpu.pipeline_mode<synchronous>, transform_indices = @transform_1, window_bounds = array<i64: 7, 256>}, {transform_indices = @transform_2, window_bounds = array<i64: 1, 4, 256>}, {transform_indices = @transform_3, window_bounds = array<i64: 1, 4, 256>}]} {
    %c0 = arith.constant 0 : index
    %c0_0 = arith.constant 0 : index
    %c0_1 = arith.constant 0 : index
    %0 = vector.load %arg3[%c0, %c0_0, %c0_1] : memref<1x4x256xf32, #tpu.memory_space<vmem>>, vector<1x4x256xf32>
    %1 = vector.shape_cast %0 : vector<1x4x256xf32> to vector<4x256xf32>
    %cst = arith.constant dense<0.000000e+00> : vector<256xf32>
    %2 = vector.multi_reduction <add>, %1, %cst [0] : vector<4x256xf32> to vector<256xf32>
    %3 = vector.shape_cast %2 : vector<256xf32> to vector<1x256xf32>
    %cst_2 = arith.constant 4.000000e+00 : f32
    %4 = vector.broadcast %cst_2 : f32 to vector<1x256xf32>
    %5 = arith.divf %3, %4 : vector<1x256xf32>
    %cst_3 = arith.constant dense<0xFF800000> : vector<256xf32>
    %6 = vector.multi_reduction <maximumf>, %1, %cst_3 [0] : vector<4x256xf32> to vector<256xf32>
    %7 = vector.shape_cast %6 : vector<256xf32> to vector<1x256xf32>
    %cst_4 = arith.constant 0.000000e+00 : f32
    %8 = vector.broadcast %cst_4 : f32 to vector<2x435xf32>
    %c0_5 = arith.constant 0 : index
    %c0_6 = arith.constant 0 : index
    %9 = vector.load %arg5[%c0_5, %c0_6] : memref<2x435xf32, #tpu.memory_space<vmem>>, vector<2x435xf32>
    tpu.vector_store %arg5[%c0_5, %c0_6], %8 {strides = array<i32>} : memref<2x435xf32, #tpu.memory_space<vmem>>, vector<2x435xf32>,
    %c0_7 = arith.constant 0 : index
    %c128 = arith.constant 128 : index
    %10 = vector.load %arg5[%c0_7, %c128] : memref<2x435xf32, #tpu.memory_space<vmem>>, vector<1x256xf32>
    tpu.vector_store %arg5[%c0_7, %c128], %5 {strides = array<i32>} : memref<2x435xf32, #tpu.memory_space<vmem>>, vector<1x256xf32>,
    %c1 = arith.constant 1 : index
    %c128_8 = arith.constant 128 : index
    %11 = vector.load %arg5[%c1, %c128_8] : memref<2x435xf32, #tpu.memory_space<vmem>>, vector<1x256xf32>
    tpu.vector_store %arg5[%c1, %c128_8], %7 {strides = array<i32>} : memref<2x435xf32, #tpu.memory_space<vmem>>, vector<1x256xf32>,
    %cst_9 = arith.constant 0.000000e+00 : f32
    %12 = vector.broadcast %cst_9 : f32 to vector<1x256xf32>
    %cst_10 = arith.constant 0.000000e+00 : f32
    %13 = vector.broadcast %cst_10 : f32 to vector<1x256xf32>
    %c0_11 = arith.constant 0 : index
    %c77 = arith.constant 77 : index
    %14 = vector.load %arg5[%c0_11, %c77] : memref<2x435xf32, #tpu.memory_space<vmem>>, vector<2x256xf32>
    %c0_12 = arith.constant 0 : index
    %15 = memref.load %arg1[%c0_12] : memref<99xf32, #tpu.memory_space<smem>>
    %c49 = arith.constant 49 : index
    %16 = memref.load %arg1[%c49] : memref<99xf32, #tpu.memory_space<smem>>
    %17 = vector.extract_strided_slice %14 {offsets = [0, 0], sizes = [1, 256], strides = [1, 1]} : vector<2x256xf32> to vector<1x256xf32>
    %18 = vector.broadcast %15 : f32 to vector<1x256xf32>
    %19 = arith.mulf %18, %17 : vector<1x256xf32>
    %20 = arith.addf %13, %19 : vector<1x256xf32>
    %21 = vector.extract_strided_slice %14 {offsets = [1, 0], sizes = [1, 256], strides = [1, 1]} : vector<2x256xf32> to vector<1x256xf32>
    %22 = vector.broadcast %16 : f32 to vector<1x256xf32>
    %23 = arith.mulf %22, %21 : vector<1x256xf32>
    %24 = arith.addf %20, %23 : vector<1x256xf32>
    %c0_13 = arith.constant 0 : index
    %c93 = arith.constant 93 : index
    %25 = vector.load %arg5[%c0_13, %c93] : memref<2x435xf32, #tpu.memory_space<vmem>>, vector<2x256xf32>
    %c7 = arith.constant 7 : index
    %26 = memref.load %arg1[%c7] : memref<99xf32, #tpu.memory_space<smem>>
    %c56 = arith.constant 56 : index
    %27 = memref.load %arg1[%c56] : memref<99xf32, #tpu.memory_space<smem>>
    %28 = vector.extract_strided_slice %25 {offsets = [0, 0], sizes = [1, 256], strides = [1, 1]} : vector<2x256xf32> to vector<1x256xf32>
    %29 = vector.broadcast %26 : f32 to vector<1x256xf32>
    %30 = arith.mulf %29, %28 : vector<1x256xf32>
    %31 = arith.addf %24, %30 : vector<1x256xf32>
    %32 = vector.extract_strided_slice %25 {offsets = [1, 0], sizes = [1, 256], strides = [1, 1]} : vector<2x256xf32> to vector<1x256xf32>
    %33 = vector.broadcast %27 : f32 to vector<1x256xf32>
    %34 = arith.mulf %33, %32 : vector<1x256xf32>
    %35 = arith.addf %31, %34 : vector<1x256xf32>
    %c0_14 = arith.constant 0 : index
    %c109 = arith.constant 109 : index
    %36 = vector.load %arg5[%c0_14, %c109] : memref<2x435xf32, #tpu.memory_space<vmem>>, vector<2x256xf32>
    %c14 = arith.constant 14 : index
    %37 = memref.load %arg1[%c14] : memref<99xf32, #tpu.memory_space<smem>>
    %c63 = arith.constant 63 : index
    %38 = memref.load %arg1[%c63] : memref<99xf32, #tpu.memory_space<smem>>
    %39 = vector.extract_strided_slice %36 {offsets = [0, 0], sizes = [1, 256], strides = [1, 1]} : vector<2x256xf32> to vector<1x256xf32>
    %40 = vector.broadcast %37 : f32 to vector<1x256xf32>
    %41 = arith.mulf %40, %39 : vector<1x256xf32>
    %42 = arith.addf %35, %41 : vector<1x256xf32>
    %43 = vector.extract_strided_slice %36 {offsets = [1, 0], sizes = [1, 256], strides = [1, 1]} : vector<2x256xf32> to vector<1x256xf32>
    %44 = vector.broadcast %38 : f32 to vector<1x256xf32>
    %45 = arith.mulf %44, %43 : vector<1x256xf32>
    %46 = arith.addf %42, %45 : vector<1x256xf32>
    %c0_15 = arith.constant 0 : index
    %c125 = arith.constant 125 : index
    %47 = vector.load %arg5[%c0_15, %c125] : memref<2x435xf32, #tpu.memory_space<vmem>>, vector<2x256xf32>
    %c21 = arith.constant 21 : index
    %48 = memref.load %arg1[%c21] : memref<99xf32, #tpu.memory_space<smem>>
    %c70 = arith.constant 70 : index
    %49 = memref.load %arg1[%c70] : memref<99xf32, #tpu.memory_space<smem>>
    %50 = vector.extract_strided_slice %47 {offsets = [0, 0], sizes = [1, 256], strides = [1, 1]} : vector<2x256xf32> to vector<1x256xf32>
    %51 = vector.broadcast %48 : f32 to vector<1x256xf32>
    %52 = arith.mulf %51, %50 : vector<1x256xf32>
    %53 = arith.addf %46, %52 : vector<1x256xf32>
    %54 = vector.extract_strided_slice %47 {offsets = [1, 0], sizes = [1, 256], strides = [1, 1]} : vector<2x256xf32> to vector<1x256xf32>
    %55 = vector.broadcast %49 : f32 to vector<1x256xf32>
    %56 = arith.mulf %55, %54 : vector<1x256xf32>
    %57 = arith.addf %53, %56 : vector<1x256xf32>
    %c0_16 = arith.constant 0 : index
    %c141 = arith.constant 141 : index
    %58 = vector.load %arg5[%c0_16, %c141] : memref<2x435xf32, #tpu.memory_space<vmem>>, vector<2x256xf32>
    %c28 = arith.constant 28 : index
    %59 = memref.load %arg1[%c28] : memref<99xf32, #tpu.memory_space<smem>>
    %c77_17 = arith.constant 77 : index
    %60 = memref.load %arg1[%c77_17] : memref<99xf32, #tpu.memory_space<smem>>
    %61 = vector.extract_strided_slice %58 {offsets = [0, 0], sizes = [1, 256], strides = [1, 1]} : vector<2x256xf32> to vector<1x256xf32>
    %62 = vector.broadcast %59 : f32 to vector<1x256xf32>
    %63 = arith.mulf %62, %61 : vector<1x256xf32>
    %64 = arith.addf %57, %63 : vector<1x256xf32>
    %65 = vector.extract_strided_slice %58 {offsets = [1, 0], sizes = [1, 256], strides = [1, 1]} : vector<2x256xf32> to vector<1x256xf32>
    %66 = vector.broadcast %60 : f32 to vector<1x256xf32>
    %67 = arith.mulf %66, %65 : vector<1x256xf32>
    %68 = arith.addf %64, %67 : vector<1x256xf32>
    %c0_18 = arith.constant 0 : index
    %c157 = arith.constant 157 : index
    %69 = vector.load %arg5[%c0_18, %c157] : memref<2x435xf32, #tpu.memory_space<vmem>>, vector<2x256xf32>
    %c35 = arith.constant 35 : index
    %70 = memref.load %arg1[%c35] : memref<99xf32, #tpu.memory_space<smem>>
    %c84 = arith.constant 84 : index
    %71 = memref.load %arg1[%c84] : memref<99xf32, #tpu.memory_space<smem>>
    %72 = vector.extract_strided_slice %69 {offsets = [0, 0], sizes = [1, 256], strides = [1, 1]} : vector<2x256xf32> to vector<1x256xf32>
    %73 = vector.broadcast %70 : f32 to vector<1x256xf32>
    %74 = arith.mulf %73, %72 : vector<1x256xf32>
    %75 = arith.addf %68, %74 : vector<1x256xf32>
    %76 = vector.extract_strided_slice %69 {offsets = [1, 0], sizes = [1, 256], strides = [1, 1]} : vector<2x256xf32> to vector<1x256xf32>
    %77 = vector.broadcast %71 : f32 to vector<1x256xf32>
    %78 = arith.mulf %77, %76 : vector<1x256xf32>
    %79 = arith.addf %75, %78 : vector<1x256xf32>
    %c0_19 = arith.constant 0 : index
    %c173 = arith.constant 173 : index
    %80 = vector.load %arg5[%c0_19, %c173] : memref<2x435xf32, #tpu.memory_space<vmem>>, vector<2x256xf32>
    %c42 = arith.constant 42 : index
    %81 = memref.load %arg1[%c42] : memref<99xf32, #tpu.memory_space<smem>>
    %c91 = arith.constant 91 : index
    %82 = memref.load %arg1[%c91] : memref<99xf32, #tpu.memory_space<smem>>
    %83 = vector.extract_strided_slice %80 {offsets = [0, 0], sizes = [1, 256], strides = [1, 1]} : vector<2x256xf32> to vector<1x256xf32>
    %84 = vector.broadcast %81 : f32 to vector<1x256xf32>
    %85 = arith.mulf %84, %83 : vector<1x256xf32>
    %86 = arith.addf %79, %85 : vector<1x256xf32>
    %87 = vector.extract_strided_slice %80 {offsets = [1, 0], sizes = [1, 256], strides = [1, 1]} : vector<2x256xf32> to vector<1x256xf32>
    %88 = vector.broadcast %82 : f32 to vector<1x256xf32>
    %89 = arith.mulf %88, %87 : vector<1x256xf32>
    %90 = arith.addf %86, %89 : vector<1x256xf32>
    %c0_20 = arith.constant 0 : index
    %c0_21 = arith.constant 0 : index
    %91 = vector.load %arg2[%c0_20, %c0_21] : memref<7x256xf32, #tpu.memory_space<vmem>>, vector<1x256xf32>
    %92 = arith.mulf %90, %91 : vector<1x256xf32>
    %93 = arith.addf %12, %92 : vector<1x256xf32>
    %cst_22 = arith.constant 0.000000e+00 : f32
    %94 = vector.broadcast %cst_22 : f32 to vector<1x256xf32>
    %c0_23 = arith.constant 0 : index
    %c78 = arith.constant 78 : index
    %95 = vector.load %arg5[%c0_23, %c78] : memref<2x435xf32, #tpu.memory_space<vmem>>, vector<2x256xf32>
    %c1_24 = arith.constant 1 : index
    %96 = memref.load %arg1[%c1_24] : memref<99xf32, #tpu.memory_space<smem>>
    %c50 = arith.constant 50 : index
    %97 = memref.load %arg1[%c50] : memref<99xf32, #tpu.memory_space<smem>>
    %98 = vector.extract_strided_slice %95 {offsets = [0, 0], sizes = [1, 256], strides = [1, 1]} : vector<2x256xf32> to vector<1x256xf32>
    %99 = vector.broadcast %96 : f32 to vector<1x256xf32>
    %100 = arith.mulf %99, %98 : vector<1x256xf32>
    %101 = arith.addf %94, %100 : vector<1x256xf32>
    %102 = vector.extract_strided_slice %95 {offsets = [1, 0], sizes = [1, 256], strides = [1, 1]} : vector<2x256xf32> to vector<1x256xf32>
    %103 = vector.broadcast %97 : f32 to vector<1x256xf32>
    %104 = arith.mulf %103, %102 : vector<1x256xf32>
    %105 = arith.addf %101, %104 : vector<1x256xf32>
    %c0_25 = arith.constant 0 : index
    %c94 = arith.constant 94 : index
    %106 = vector.load %arg5[%c0_25, %c94] : memref<2x435xf32, #tpu.memory_space<vmem>>, vector<2x256xf32>
    %c8 = arith.constant 8 : index
    %107 = memref.load %arg1[%c8] : memref<99xf32, #tpu.memory_space<smem>>
    %c57 = arith.constant 57 : index
    %108 = memref.load %arg1[%c57] : memref<99xf32, #tpu.memory_space<smem>>
    %109 = vector.extract_strided_slice %106 {offsets = [0, 0], sizes = [1, 256], strides = [1, 1]} : vector<2x256xf32> to vector<1x256xf32>
    %110 = vector.broadcast %107 : f32 to vector<1x256xf32>
    %111 = arith.mulf %110, %109 : vector<1x256xf32>
    %112 = arith.addf %105, %111 : vector<1x256xf32>
    %113 = vector.extract_strided_slice %106 {offsets = [1, 0], sizes = [1, 256], strides = [1, 1]} : vector<2x256xf32> to vector<1x256xf32>
    %114 = vector.broadcast %108 : f32 to vector<1x256xf32>
    %115 = arith.mulf %114, %113 : vector<1x256xf32>
    %116 = arith.addf %112, %115 : vector<1x256xf32>
    %c0_26 = arith.constant 0 : index
    %c110 = arith.constant 110 : index
    %117 = vector.load %arg5[%c0_26, %c110] : memref<2x435xf32, #tpu.memory_space<vmem>>, vector<2x256xf32>
    %c15 = arith.constant 15 : index
    %118 = memref.load %arg1[%c15] : memref<99xf32, #tpu.memory_space<smem>>
    %c64 = arith.constant 64 : index
    %119 = memref.load %arg1[%c64] : memref<99xf32, #tpu.memory_space<smem>>
    %120 = vector.extract_strided_slice %117 {offsets = [0, 0], sizes = [1, 256], strides = [1, 1]} : vector<2x256xf32> to vector<1x256xf32>
    %121 = vector.broadcast %118 : f32 to vector<1x256xf32>
    %122 = arith.mulf %121, %120 : vector<1x256xf32>
    %123 = arith.addf %116, %122 : vector<1x256xf32>
    %124 = vector.extract_strided_slice %117 {offsets = [1, 0], sizes = [1, 256], strides = [1, 1]} : vector<2x256xf32> to vector<1x256xf32>
    %125 = vector.broadcast %119 : f32 to vector<1x256xf32>
    %126 = arith.mulf %125, %124 : vector<1x256xf32>
    %127 = arith.addf %123, %126 : vector<1x256xf32>
    %c0_27 = arith.constant 0 : index
    %c126 = arith.constant 126 : index
    %128 = vector.load %arg5[%c0_27, %c126] : memref<2x435xf32, #tpu.memory_space<vmem>>, vector<2x256xf32>
    %c22 = arith.constant 22 : index
    %129 = memref.load %arg1[%c22] : memref<99xf32, #tpu.memory_space<smem>>
    %c71 = arith.constant 71 : index
    %130 = memref.load %arg1[%c71] : memref<99xf32, #tpu.memory_space<smem>>
    %131 = vector.extract_strided_slice %128 {offsets = [0, 0], sizes = [1, 256], strides = [1, 1]} : vector<2x256xf32> to vector<1x256xf32>
    %132 = vector.broadcast %129 : f32 to vector<1x256xf32>
    %133 = arith.mulf %132, %131 : vector<1x256xf32>
    %134 = arith.addf %127, %133 : vector<1x256xf32>
    %135 = vector.extract_strided_slice %128 {offsets = [1, 0], sizes = [1, 256], strides = [1, 1]} : vector<2x256xf32> to vector<1x256xf32>
    %136 = vector.broadcast %130 : f32 to vector<1x256xf32>
    %137 = arith.mulf %136, %135 : vector<1x256xf32>
    %138 = arith.addf %134, %137 : vector<1x256xf32>
    %c0_28 = arith.constant 0 : index
    %c142 = arith.constant 142 : index
    %139 = vector.load %arg5[%c0_28, %c142] : memref<2x435xf32, #tpu.memory_space<vmem>>, vector<2x256xf32>
    %c29 = arith.constant 29 : index
    %140 = memref.load %arg1[%c29] : memref<99xf32, #tpu.memory_space<smem>>
    %c78_29 = arith.constant 78 : index
    %141 = memref.load %arg1[%c78_29] : memref<99xf32, #tpu.memory_space<smem>>
    %142 = vector.extract_strided_slice %139 {offsets = [0, 0], sizes = [1, 256], strides = [1, 1]} : vector<2x256xf32> to vector<1x256xf32>
    %143 = vector.broadcast %140 : f32 to vector<1x256xf32>
    %144 = arith.mulf %143, %142 : vector<1x256xf32>
    %145 = arith.addf %138, %144 : vector<1x256xf32>
    %146 = vector.extract_strided_slice %139 {offsets = [1, 0], sizes = [1, 256], strides = [1, 1]} : vector<2x256xf32> to vector<1x256xf32>
    %147 = vector.broadcast %141 : f32 to vector<1x256xf32>
    %148 = arith.mulf %147, %146 : vector<1x256xf32>
    %149 = arith.addf %145, %148 : vector<1x256xf32>
    %c0_30 = arith.constant 0 : index
    %c158 = arith.constant 158 : index
    %150 = vector.load %arg5[%c0_30, %c158] : memref<2x435xf32, #tpu.memory_space<vmem>>, vector<2x256xf32>
    %c36 = arith.constant 36 : index
    %151 = memref.load %arg1[%c36] : memref<99xf32, #tpu.memory_space<smem>>
    %c85 = arith.constant 85 : index
    %152 = memref.load %arg1[%c85] : memref<99xf32, #tpu.memory_space<smem>>
    %153 = vector.extract_strided_slice %150 {offsets = [0, 0], sizes = [1, 256], strides = [1, 1]} : vector<2x256xf32> to vector<1x256xf32>
    %154 = vector.broadcast %151 : f32 to vector<1x256xf32>
    %155 = arith.mulf %154, %153 : vector<1x256xf32>
    %156 = arith.addf %149, %155 : vector<1x256xf32>
    %157 = vector.extract_strided_slice %150 {offsets = [1, 0], sizes = [1, 256], strides = [1, 1]} : vector<2x256xf32> to vector<1x256xf32>
    %158 = vector.broadcast %152 : f32 to vector<1x256xf32>
    %159 = arith.mulf %158, %157 : vector<1x256xf32>
    %160 = arith.addf %156, %159 : vector<1x256xf32>
    %c0_31 = arith.constant 0 : index
    %c174 = arith.constant 174 : index
    %161 = vector.load %arg5[%c0_31, %c174] : memref<2x435xf32, #tpu.memory_space<vmem>>, vector<2x256xf32>
    %c43 = arith.constant 43 : index
    %162 = memref.load %arg1[%c43] : memref<99xf32, #tpu.memory_space<smem>>
    %c92 = arith.constant 92 : index
    %163 = memref.load %arg1[%c92] : memref<99xf32, #tpu.memory_space<smem>>
    %164 = vector.extract_strided_slice %161 {offsets = [0, 0], sizes = [1, 256], strides = [1, 1]} : vector<2x256xf32> to vector<1x256xf32>
    %165 = vector.broadcast %162 : f32 to vector<1x256xf32>
    %166 = arith.mulf %165, %164 : vector<1x256xf32>
    %167 = arith.addf %160, %166 : vector<1x256xf32>
    %168 = vector.extract_strided_slice %161 {offsets = [1, 0], sizes = [1, 256], strides = [1, 1]} : vector<2x256xf32> to vector<1x256xf32>
    %169 = vector.broadcast %163 : f32 to vector<1x256xf32>
    %170 = arith.mulf %169, %168 : vector<1x256xf32>
    %171 = arith.addf %167, %170 : vector<1x256xf32>
    %c1_32 = arith.constant 1 : index
    %c0_33 = arith.constant 0 : index
    %172 = vector.load %arg2[%c1_32, %c0_33] : memref<7x256xf32, #tpu.memory_space<vmem>>, vector<1x256xf32>
    %173 = arith.mulf %171, %172 : vector<1x256xf32>
    %174 = arith.addf %93, %173 : vector<1x256xf32>
    %cst_34 = arith.constant 0.000000e+00 : f32
    %175 = vector.broadcast %cst_34 : f32 to vector<1x256xf32>
    %c0_35 = arith.constant 0 : index
    %c79 = arith.constant 79 : index
    %176 = vector.load %arg5[%c0_35, %c79] : memref<2x435xf32, #tpu.memory_space<vmem>>, vector<2x256xf32>
    %c2 = arith.constant 2 : index
    %177 = memref.load %arg1[%c2] : memref<99xf32, #tpu.memory_space<smem>>
    %c51 = arith.constant 51 : index
    %178 = memref.load %arg1[%c51] : memref<99xf32, #tpu.memory_space<smem>>
    %179 = vector.extract_strided_slice %176 {offsets = [0, 0], sizes = [1, 256], strides = [1, 1]} : vector<2x256xf32> to vector<1x256xf32>
    %180 = vector.broadcast %177 : f32 to vector<1x256xf32>
    %181 = arith.mulf %180, %179 : vector<1x256xf32>
    %182 = arith.addf %175, %181 : vector<1x256xf32>
    %183 = vector.extract_strided_slice %176 {offsets = [1, 0], sizes = [1, 256], strides = [1, 1]} : vector<2x256xf32> to vector<1x256xf32>
    %184 = vector.broadcast %178 : f32 to vector<1x256xf32>
    %185 = arith.mulf %184, %183 : vector<1x256xf32>
    %186 = arith.addf %182, %185 : vector<1x256xf32>
    %c0_36 = arith.constant 0 : index
    %c95 = arith.constant 95 : index
    %187 = vector.load %arg5[%c0_36, %c95] : memref<2x435xf32, #tpu.memory_space<vmem>>, vector<2x256xf32>
    %c9 = arith.constant 9 : index
    %188 = memref.load %arg1[%c9] : memref<99xf32, #tpu.memory_space<smem>>
    %c58 = arith.constant 58 : index
    %189 = memref.load %arg1[%c58] : memref<99xf32, #tpu.memory_space<smem>>
    %190 = vector.extract_strided_slice %187 {offsets = [0, 0], sizes = [1, 256], strides = [1, 1]} : vector<2x256xf32> to vector<1x256xf32>
    %191 = vector.broadcast %188 : f32 to vector<1x256xf32>
    %192 = arith.mulf %191, %190 : vector<1x256xf32>
    %193 = arith.addf %186, %192 : vector<1x256xf32>
    %194 = vector.extract_strided_slice %187 {offsets = [1, 0], sizes = [1, 256], strides = [1, 1]} : vector<2x256xf32> to vector<1x256xf32>
    %195 = vector.broadcast %189 : f32 to vector<1x256xf32>
    %196 = arith.mulf %195, %194 : vector<1x256xf32>
    %197 = arith.addf %193, %196 : vector<1x256xf32>
    %c0_37 = arith.constant 0 : index
    %c111 = arith.constant 111 : index
    %198 = vector.load %arg5[%c0_37, %c111] : memref<2x435xf32, #tpu.memory_space<vmem>>, vector<2x256xf32>
    %c16 = arith.constant 16 : index
    %199 = memref.load %arg1[%c16] : memref<99xf32, #tpu.memory_space<smem>>
    %c65 = arith.constant 65 : index
    %200 = memref.load %arg1[%c65] : memref<99xf32, #tpu.memory_space<smem>>
    %201 = vector.extract_strided_slice %198 {offsets = [0, 0], sizes = [1, 256], strides = [1, 1]} : vector<2x256xf32> to vector<1x256xf32>
    %202 = vector.broadcast %199 : f32 to vector<1x256xf32>
    %203 = arith.mulf %202, %201 : vector<1x256xf32>
    %204 = arith.addf %197, %203 : vector<1x256xf32>
    %205 = vector.extract_strided_slice %198 {offsets = [1, 0], sizes = [1, 256], strides = [1, 1]} : vector<2x256xf32> to vector<1x256xf32>
    %206 = vector.broadcast %200 : f32 to vector<1x256xf32>
    %207 = arith.mulf %206, %205 : vector<1x256xf32>
    %208 = arith.addf %204, %207 : vector<1x256xf32>
    %c0_38 = arith.constant 0 : index
    %c127 = arith.constant 127 : index
    %209 = vector.load %arg5[%c0_38, %c127] : memref<2x435xf32, #tpu.memory_space<vmem>>, vector<2x256xf32>
    %c23 = arith.constant 23 : index
    %210 = memref.load %arg1[%c23] : memref<99xf32, #tpu.memory_space<smem>>
    %c72 = arith.constant 72 : index
    %211 = memref.load %arg1[%c72] : memref<99xf32, #tpu.memory_space<smem>>
    %212 = vector.extract_strided_slice %209 {offsets = [0, 0], sizes = [1, 256], strides = [1, 1]} : vector<2x256xf32> to vector<1x256xf32>
    %213 = vector.broadcast %210 : f32 to vector<1x256xf32>
    %214 = arith.mulf %213, %212 : vector<1x256xf32>
    %215 = arith.addf %208, %214 : vector<1x256xf32>
    %216 = vector.extract_strided_slice %209 {offsets = [1, 0], sizes = [1, 256], strides = [1, 1]} : vector<2x256xf32> to vector<1x256xf32>
    %217 = vector.broadcast %211 : f32 to vector<1x256xf32>
    %218 = arith.mulf %217, %216 : vector<1x256xf32>
    %219 = arith.addf %215, %218 : vector<1x256xf32>
    %c0_39 = arith.constant 0 : index
    %c143 = arith.constant 143 : index
    %220 = vector.load %arg5[%c0_39, %c143] : memref<2x435xf32, #tpu.memory_space<vmem>>, vector<2x256xf32>
    %c30 = arith.constant 30 : index
    %221 = memref.load %arg1[%c30] : memref<99xf32, #tpu.memory_space<smem>>
    %c79_40 = arith.constant 79 : index
    %222 = memref.load %arg1[%c79_40] : memref<99xf32, #tpu.memory_space<smem>>
    %223 = vector.extract_strided_slice %220 {offsets = [0, 0], sizes = [1, 256], strides = [1, 1]} : vector<2x256xf32> to vector<1x256xf32>
    %224 = vector.broadcast %221 : f32 to vector<1x256xf32>
    %225 = arith.mulf %224, %223 : vector<1x256xf32>
    %226 = arith.addf %219, %225 : vector<1x256xf32>
    %227 = vector.extract_strided_slice %220 {offsets = [1, 0], sizes = [1, 256], strides = [1, 1]} : vector<2x256xf32> to vector<1x256xf32>
    %228 = vector.broadcast %222 : f32 to vector<1x256xf32>
    %229 = arith.mulf %228, %227 : vector<1x256xf32>
    %230 = arith.addf %226, %229 : vector<1x256xf32>
    %c0_41 = arith.constant 0 : index
    %c159 = arith.constant 159 : index
    %231 = vector.load %arg5[%c0_41, %c159] : memref<2x435xf32, #tpu.memory_space<vmem>>, vector<2x256xf32>
    %c37 = arith.constant 37 : index
    %232 = memref.load %arg1[%c37] : memref<99xf32, #tpu.memory_space<smem>>
    %c86 = arith.constant 86 : index
    %233 = memref.load %arg1[%c86] : memref<99xf32, #tpu.memory_space<smem>>
    %234 = vector.extract_strided_slice %231 {offsets = [0, 0], sizes = [1, 256], strides = [1, 1]} : vector<2x256xf32> to vector<1x256xf32>
    %235 = vector.broadcast %232 : f32 to vector<1x256xf32>
    %236 = arith.mulf %235, %234 : vector<1x256xf32>
    %237 = arith.addf %230, %236 : vector<1x256xf32>
    %238 = vector.extract_strided_slice %231 {offsets = [1, 0], sizes = [1, 256], strides = [1, 1]} : vector<2x256xf32> to vector<1x256xf32>
    %239 = vector.broadcast %233 : f32 to vector<1x256xf32>
    %240 = arith.mulf %239, %238 : vector<1x256xf32>
    %241 = arith.addf %237, %240 : vector<1x256xf32>
    %c0_42 = arith.constant 0 : index
    %c175 = arith.constant 175 : index
    %242 = vector.load %arg5[%c0_42, %c175] : memref<2x435xf32, #tpu.memory_space<vmem>>, vector<2x256xf32>
    %c44 = arith.constant 44 : index
    %243 = memref.load %arg1[%c44] : memref<99xf32, #tpu.memory_space<smem>>
    %c93_43 = arith.constant 93 : index
    %244 = memref.load %arg1[%c93_43] : memref<99xf32, #tpu.memory_space<smem>>
    %245 = vector.extract_strided_slice %242 {offsets = [0, 0], sizes = [1, 256], strides = [1, 1]} : vector<2x256xf32> to vector<1x256xf32>
    %246 = vector.broadcast %243 : f32 to vector<1x256xf32>
    %247 = arith.mulf %246, %245 : vector<1x256xf32>
    %248 = arith.addf %241, %247 : vector<1x256xf32>
    %249 = vector.extract_strided_slice %242 {offsets = [1, 0], sizes = [1, 256], strides = [1, 1]} : vector<2x256xf32> to vector<1x256xf32>
    %250 = vector.broadcast %244 : f32 to vector<1x256xf32>
    %251 = arith.mulf %250, %249 : vector<1x256xf32>
    %252 = arith.addf %248, %251 : vector<1x256xf32>
    %c2_44 = arith.constant 2 : index
    %c0_45 = arith.constant 0 : index
    %253 = vector.load %arg2[%c2_44, %c0_45] : memref<7x256xf32, #tpu.memory_space<vmem>>, vector<1x256xf32>
    %254 = arith.mulf %252, %253 : vector<1x256xf32>
    %255 = arith.addf %174, %254 : vector<1x256xf32>
    %cst_46 = arith.constant 0.000000e+00 : f32
    %256 = vector.broadcast %cst_46 : f32 to vector<1x256xf32>
    %c0_47 = arith.constant 0 : index
    %c80 = arith.constant 80 : index
    %257 = vector.load %arg5[%c0_47, %c80] : memref<2x435xf32, #tpu.memory_space<vmem>>, vector<2x256xf32>
    %c3 = arith.constant 3 : index
    %258 = memref.load %arg1[%c3] : memref<99xf32, #tpu.memory_space<smem>>
    %c52 = arith.constant 52 : index
    %259 = memref.load %arg1[%c52] : memref<99xf32, #tpu.memory_space<smem>>
    %260 = vector.extract_strided_slice %257 {offsets = [0, 0], sizes = [1, 256], strides = [1, 1]} : vector<2x256xf32> to vector<1x256xf32>
    %261 = vector.broadcast %258 : f32 to vector<1x256xf32>
    %262 = arith.mulf %261, %260 : vector<1x256xf32>
    %263 = arith.addf %256, %262 : vector<1x256xf32>
    %264 = vector.extract_strided_slice %257 {offsets = [1, 0], sizes = [1, 256], strides = [1, 1]} : vector<2x256xf32> to vector<1x256xf32>
    %265 = vector.broadcast %259 : f32 to vector<1x256xf32>
    %266 = arith.mulf %265, %264 : vector<1x256xf32>
    %267 = arith.addf %263, %266 : vector<1x256xf32>
    %c0_48 = arith.constant 0 : index
    %c96 = arith.constant 96 : index
    %268 = vector.load %arg5[%c0_48, %c96] : memref<2x435xf32, #tpu.memory_space<vmem>>, vector<2x256xf32>
    %c10 = arith.constant 10 : index
    %269 = memref.load %arg1[%c10] : memref<99xf32, #tpu.memory_space<smem>>
    %c59 = arith.constant 59 : index
    %270 = memref.load %arg1[%c59] : memref<99xf32, #tpu.memory_space<smem>>
    %271 = vector.extract_strided_slice %268 {offsets = [0, 0], sizes = [1, 256], strides = [1, 1]} : vector<2x256xf32> to vector<1x256xf32>
    %272 = vector.broadcast %269 : f32 to vector<1x256xf32>
    %273 = arith.mulf %272, %271 : vector<1x256xf32>
    %274 = arith.addf %267, %273 : vector<1x256xf32>
    %275 = vector.extract_strided_slice %268 {offsets = [1, 0], sizes = [1, 256], strides = [1, 1]} : vector<2x256xf32> to vector<1x256xf32>
    %276 = vector.broadcast %270 : f32 to vector<1x256xf32>
    %277 = arith.mulf %276, %275 : vector<1x256xf32>
    %278 = arith.addf %274, %277 : vector<1x256xf32>
    %c0_49 = arith.constant 0 : index
    %c112 = arith.constant 112 : index
    %279 = vector.load %arg5[%c0_49, %c112] : memref<2x435xf32, #tpu.memory_space<vmem>>, vector<2x256xf32>
    %c17 = arith.constant 17 : index
    %280 = memref.load %arg1[%c17] : memref<99xf32, #tpu.memory_space<smem>>
    %c66 = arith.constant 66 : index
    %281 = memref.load %arg1[%c66] : memref<99xf32, #tpu.memory_space<smem>>
    %282 = vector.extract_strided_slice %279 {offsets = [0, 0], sizes = [1, 256], strides = [1, 1]} : vector<2x256xf32> to vector<1x256xf32>
    %283 = vector.broadcast %280 : f32 to vector<1x256xf32>
    %284 = arith.mulf %283, %282 : vector<1x256xf32>
    %285 = arith.addf %278, %284 : vector<1x256xf32>
    %286 = vector.extract_strided_slice %279 {offsets = [1, 0], sizes = [1, 256], strides = [1, 1]} : vector<2x256xf32> to vector<1x256xf32>
    %287 = vector.broadcast %281 : f32 to vector<1x256xf32>
    %288 = arith.mulf %287, %286 : vector<1x256xf32>
    %289 = arith.addf %285, %288 : vector<1x256xf32>
    %c0_50 = arith.constant 0 : index
    %c128_51 = arith.constant 128 : index
    %290 = vector.load %arg5[%c0_50, %c128_51] : memref<2x435xf32, #tpu.memory_space<vmem>>, vector<2x256xf32>
    %c24 = arith.constant 24 : index
    %291 = memref.load %arg1[%c24] : memref<99xf32, #tpu.memory_space<smem>>
    %c73 = arith.constant 73 : index
    %292 = memref.load %arg1[%c73] : memref<99xf32, #tpu.memory_space<smem>>
    %293 = vector.extract_strided_slice %290 {offsets = [0, 0], sizes = [1, 256], strides = [1, 1]} : vector<2x256xf32> to vector<1x256xf32>
    %294 = vector.broadcast %291 : f32 to vector<1x256xf32>
    %295 = arith.mulf %294, %293 : vector<1x256xf32>
    %296 = arith.addf %289, %295 : vector<1x256xf32>
    %297 = vector.extract_strided_slice %290 {offsets = [1, 0], sizes = [1, 256], strides = [1, 1]} : vector<2x256xf32> to vector<1x256xf32>
    %298 = vector.broadcast %292 : f32 to vector<1x256xf32>
    %299 = arith.mulf %298, %297 : vector<1x256xf32>
    %300 = arith.addf %296, %299 : vector<1x256xf32>
    %c0_52 = arith.constant 0 : index
    %c144 = arith.constant 144 : index
    %301 = vector.load %arg5[%c0_52, %c144] : memref<2x435xf32, #tpu.memory_space<vmem>>, vector<2x256xf32>
    %c31 = arith.constant 31 : index
    %302 = memref.load %arg1[%c31] : memref<99xf32, #tpu.memory_space<smem>>
    %c80_53 = arith.constant 80 : index
    %303 = memref.load %arg1[%c80_53] : memref<99xf32, #tpu.memory_space<smem>>
    %304 = vector.extract_strided_slice %301 {offsets = [0, 0], sizes = [1, 256], strides = [1, 1]} : vector<2x256xf32> to vector<1x256xf32>
    %305 = vector.broadcast %302 : f32 to vector<1x256xf32>
    %306 = arith.mulf %305, %304 : vector<1x256xf32>
    %307 = arith.addf %300, %306 : vector<1x256xf32>
    %308 = vector.extract_strided_slice %301 {offsets = [1, 0], sizes = [1, 256], strides = [1, 1]} : vector<2x256xf32> to vector<1x256xf32>
    %309 = vector.broadcast %303 : f32 to vector<1x256xf32>
    %310 = arith.mulf %309, %308 : vector<1x256xf32>
    %311 = arith.addf %307, %310 : vector<1x256xf32>
    %c0_54 = arith.constant 0 : index
    %c160 = arith.constant 160 : index
    %312 = vector.load %arg5[%c0_54, %c160] : memref<2x435xf32, #tpu.memory_space<vmem>>, vector<2x256xf32>
    %c38 = arith.constant 38 : index
    %313 = memref.load %arg1[%c38] : memref<99xf32, #tpu.memory_space<smem>>
    %c87 = arith.constant 87 : index
    %314 = memref.load %arg1[%c87] : memref<99xf32, #tpu.memory_space<smem>>
    %315 = vector.extract_strided_slice %312 {offsets = [0, 0], sizes = [1, 256], strides = [1, 1]} : vector<2x256xf32> to vector<1x256xf32>
    %316 = vector.broadcast %313 : f32 to vector<1x256xf32>
    %317 = arith.mulf %316, %315 : vector<1x256xf32>
    %318 = arith.addf %311, %317 : vector<1x256xf32>
    %319 = vector.extract_strided_slice %312 {offsets = [1, 0], sizes = [1, 256], strides = [1, 1]} : vector<2x256xf32> to vector<1x256xf32>
    %320 = vector.broadcast %314 : f32 to vector<1x256xf32>
    %321 = arith.mulf %320, %319 : vector<1x256xf32>
    %322 = arith.addf %318, %321 : vector<1x256xf32>
    %c0_55 = arith.constant 0 : index
    %c176 = arith.constant 176 : index
    %323 = vector.load %arg5[%c0_55, %c176] : memref<2x435xf32, #tpu.memory_space<vmem>>, vector<2x256xf32>
    %c45 = arith.constant 45 : index
    %324 = memref.load %arg1[%c45] : memref<99xf32, #tpu.memory_space<smem>>
    %c94_56 = arith.constant 94 : index
    %325 = memref.load %arg1[%c94_56] : memref<99xf32, #tpu.memory_space<smem>>
    %326 = vector.extract_strided_slice %323 {offsets = [0, 0], sizes = [1, 256], strides = [1, 1]} : vector<2x256xf32> to vector<1x256xf32>
    %327 = vector.broadcast %324 : f32 to vector<1x256xf32>
    %328 = arith.mulf %327, %326 : vector<1x256xf32>
    %329 = arith.addf %322, %328 : vector<1x256xf32>
    %330 = vector.extract_strided_slice %323 {offsets = [1, 0], sizes = [1, 256], strides = [1, 1]} : vector<2x256xf32> to vector<1x256xf32>
    %331 = vector.broadcast %325 : f32 to vector<1x256xf32>
    %332 = arith.mulf %331, %330 : vector<1x256xf32>
    %333 = arith.addf %329, %332 : vector<1x256xf32>
    %334 = arith.addf %255, %333 : vector<1x256xf32>
    %cst_57 = arith.constant 0.000000e+00 : f32
    %335 = vector.broadcast %cst_57 : f32 to vector<1x256xf32>
    %c0_58 = arith.constant 0 : index
    %c81 = arith.constant 81 : index
    %336 = vector.load %arg5[%c0_58, %c81] : memref<2x435xf32, #tpu.memory_space<vmem>>, vector<2x256xf32>
    %c4 = arith.constant 4 : index
    %337 = memref.load %arg1[%c4] : memref<99xf32, #tpu.memory_space<smem>>
    %c53 = arith.constant 53 : index
    %338 = memref.load %arg1[%c53] : memref<99xf32, #tpu.memory_space<smem>>
    %339 = vector.extract_strided_slice %336 {offsets = [0, 0], sizes = [1, 256], strides = [1, 1]} : vector<2x256xf32> to vector<1x256xf32>
    %340 = vector.broadcast %337 : f32 to vector<1x256xf32>
    %341 = arith.mulf %340, %339 : vector<1x256xf32>
    %342 = arith.addf %335, %341 : vector<1x256xf32>
    %343 = vector.extract_strided_slice %336 {offsets = [1, 0], sizes = [1, 256], strides = [1, 1]} : vector<2x256xf32> to vector<1x256xf32>
    %344 = vector.broadcast %338 : f32 to vector<1x256xf32>
    %345 = arith.mulf %344, %343 : vector<1x256xf32>
    %346 = arith.addf %342, %345 : vector<1x256xf32>
    %c0_59 = arith.constant 0 : index
    %c97 = arith.constant 97 : index
    %347 = vector.load %arg5[%c0_59, %c97] : memref<2x435xf32, #tpu.memory_space<vmem>>, vector<2x256xf32>
    %c11 = arith.constant 11 : index
    %348 = memref.load %arg1[%c11] : memref<99xf32, #tpu.memory_space<smem>>
    %c60 = arith.constant 60 : index
    %349 = memref.load %arg1[%c60] : memref<99xf32, #tpu.memory_space<smem>>
    %350 = vector.extract_strided_slice %347 {offsets = [0, 0], sizes = [1, 256], strides = [1, 1]} : vector<2x256xf32> to vector<1x256xf32>
    %351 = vector.broadcast %348 : f32 to vector<1x256xf32>
    %352 = arith.mulf %351, %350 : vector<1x256xf32>
    %353 = arith.addf %346, %352 : vector<1x256xf32>
    %354 = vector.extract_strided_slice %347 {offsets = [1, 0], sizes = [1, 256], strides = [1, 1]} : vector<2x256xf32> to vector<1x256xf32>
    %355 = vector.broadcast %349 : f32 to vector<1x256xf32>
    %356 = arith.mulf %355, %354 : vector<1x256xf32>
    %357 = arith.addf %353, %356 : vector<1x256xf32>
    %c0_60 = arith.constant 0 : index
    %c113 = arith.constant 113 : index
    %358 = vector.load %arg5[%c0_60, %c113] : memref<2x435xf32, #tpu.memory_space<vmem>>, vector<2x256xf32>
    %c18 = arith.constant 18 : index
    %359 = memref.load %arg1[%c18] : memref<99xf32, #tpu.memory_space<smem>>
    %c67 = arith.constant 67 : index
    %360 = memref.load %arg1[%c67] : memref<99xf32, #tpu.memory_space<smem>>
    %361 = vector.extract_strided_slice %358 {offsets = [0, 0], sizes = [1, 256], strides = [1, 1]} : vector<2x256xf32> to vector<1x256xf32>
    %362 = vector.broadcast %359 : f32 to vector<1x256xf32>
    %363 = arith.mulf %362, %361 : vector<1x256xf32>
    %364 = arith.addf %357, %363 : vector<1x256xf32>
    %365 = vector.extract_strided_slice %358 {offsets = [1, 0], sizes = [1, 256], strides = [1, 1]} : vector<2x256xf32> to vector<1x256xf32>
    %366 = vector.broadcast %360 : f32 to vector<1x256xf32>
    %367 = arith.mulf %366, %365 : vector<1x256xf32>
    %368 = arith.addf %364, %367 : vector<1x256xf32>
    %c0_61 = arith.constant 0 : index
    %c129 = arith.constant 129 : index
    %369 = vector.load %arg5[%c0_61, %c129] : memref<2x435xf32, #tpu.memory_space<vmem>>, vector<2x256xf32>
    %c25 = arith.constant 25 : index
    %370 = memref.load %arg1[%c25] : memref<99xf32, #tpu.memory_space<smem>>
    %c74 = arith.constant 74 : index
    %371 = memref.load %arg1[%c74] : memref<99xf32, #tpu.memory_space<smem>>
    %372 = vector.extract_strided_slice %369 {offsets = [0, 0], sizes = [1, 256], strides = [1, 1]} : vector<2x256xf32> to vector<1x256xf32>
    %373 = vector.broadcast %370 : f32 to vector<1x256xf32>
    %374 = arith.mulf %373, %372 : vector<1x256xf32>
    %375 = arith.addf %368, %374 : vector<1x256xf32>
    %376 = vector.extract_strided_slice %369 {offsets = [1, 0], sizes = [1, 256], strides = [1, 1]} : vector<2x256xf32> to vector<1x256xf32>
    %377 = vector.broadcast %371 : f32 to vector<1x256xf32>
    %378 = arith.mulf %377, %376 : vector<1x256xf32>
    %379 = arith.addf %375, %378 : vector<1x256xf32>
    %c0_62 = arith.constant 0 : index
    %c145 = arith.constant 145 : index
    %380 = vector.load %arg5[%c0_62, %c145] : memref<2x435xf32, #tpu.memory_space<vmem>>, vector<2x256xf32>
    %c32 = arith.constant 32 : index
    %381 = memref.load %arg1[%c32] : memref<99xf32, #tpu.memory_space<smem>>
    %c81_63 = arith.constant 81 : index
    %382 = memref.load %arg1[%c81_63] : memref<99xf32, #tpu.memory_space<smem>>
    %383 = vector.extract_strided_slice %380 {offsets = [0, 0], sizes = [1, 256], strides = [1, 1]} : vector<2x256xf32> to vector<1x256xf32>
    %384 = vector.broadcast %381 : f32 to vector<1x256xf32>
    %385 = arith.mulf %384, %383 : vector<1x256xf32>
    %386 = arith.addf %379, %385 : vector<1x256xf32>
    %387 = vector.extract_strided_slice %380 {offsets = [1, 0], sizes = [1, 256], strides = [1, 1]} : vector<2x256xf32> to vector<1x256xf32>
    %388 = vector.broadcast %382 : f32 to vector<1x256xf32>
    %389 = arith.mulf %388, %387 : vector<1x256xf32>
    %390 = arith.addf %386, %389 : vector<1x256xf32>
    %c0_64 = arith.constant 0 : index
    %c161 = arith.constant 161 : index
    %391 = vector.load %arg5[%c0_64, %c161] : memref<2x435xf32, #tpu.memory_space<vmem>>, vector<2x256xf32>
    %c39 = arith.constant 39 : index
    %392 = memref.load %arg1[%c39] : memref<99xf32, #tpu.memory_space<smem>>
    %c88 = arith.constant 88 : index
    %393 = memref.load %arg1[%c88] : memref<99xf32, #tpu.memory_space<smem>>
    %394 = vector.extract_strided_slice %391 {offsets = [0, 0], sizes = [1, 256], strides = [1, 1]} : vector<2x256xf32> to vector<1x256xf32>
    %395 = vector.broadcast %392 : f32 to vector<1x256xf32>
    %396 = arith.mulf %395, %394 : vector<1x256xf32>
    %397 = arith.addf %390, %396 : vector<1x256xf32>
    %398 = vector.extract_strided_slice %391 {offsets = [1, 0], sizes = [1, 256], strides = [1, 1]} : vector<2x256xf32> to vector<1x256xf32>
    %399 = vector.broadcast %393 : f32 to vector<1x256xf32>
    %400 = arith.mulf %399, %398 : vector<1x256xf32>
    %401 = arith.addf %397, %400 : vector<1x256xf32>
    %c0_65 = arith.constant 0 : index
    %c177 = arith.constant 177 : index
    %402 = vector.load %arg5[%c0_65, %c177] : memref<2x435xf32, #tpu.memory_space<vmem>>, vector<2x256xf32>
    %c46 = arith.constant 46 : index
    %403 = memref.load %arg1[%c46] : memref<99xf32, #tpu.memory_space<smem>>
    %c95_66 = arith.constant 95 : index
    %404 = memref.load %arg1[%c95_66] : memref<99xf32, #tpu.memory_space<smem>>
    %405 = vector.extract_strided_slice %402 {offsets = [0, 0], sizes = [1, 256], strides = [1, 1]} : vector<2x256xf32> to vector<1x256xf32>
    %406 = vector.broadcast %403 : f32 to vector<1x256xf32>
    %407 = arith.mulf %406, %405 : vector<1x256xf32>
    %408 = arith.addf %401, %407 : vector<1x256xf32>
    %409 = vector.extract_strided_slice %402 {offsets = [1, 0], sizes = [1, 256], strides = [1, 1]} : vector<2x256xf32> to vector<1x256xf32>
    %410 = vector.broadcast %404 : f32 to vector<1x256xf32>
    %411 = arith.mulf %410, %409 : vector<1x256xf32>
    %412 = arith.addf %408, %411 : vector<1x256xf32>
    %c4_67 = arith.constant 4 : index
    %c0_68 = arith.constant 0 : index
    %413 = vector.load %arg2[%c4_67, %c0_68] : memref<7x256xf32, #tpu.memory_space<vmem>>, vector<1x256xf32>
    %414 = arith.mulf %412, %413 : vector<1x256xf32>
    %415 = arith.addf %334, %414 : vector<1x256xf32>
    %cst_69 = arith.constant 0.000000e+00 : f32
    %416 = vector.broadcast %cst_69 : f32 to vector<1x256xf32>
    %c0_70 = arith.constant 0 : index
    %c82 = arith.constant 82 : index
    %417 = vector.load %arg5[%c0_70, %c82] : memref<2x435xf32, #tpu.memory_space<vmem>>, vector<2x256xf32>
    %c5 = arith.constant 5 : index
    %418 = memref.load %arg1[%c5] : memref<99xf32, #tpu.memory_space<smem>>
    %c54 = arith.constant 54 : index
    %419 = memref.load %arg1[%c54] : memref<99xf32, #tpu.memory_space<smem>>
    %420 = vector.extract_strided_slice %417 {offsets = [0, 0], sizes = [1, 256], strides = [1, 1]} : vector<2x256xf32> to vector<1x256xf32>
    %421 = vector.broadcast %418 : f32 to vector<1x256xf32>
    %422 = arith.mulf %421, %420 : vector<1x256xf32>
    %423 = arith.addf %416, %422 : vector<1x256xf32>
    %424 = vector.extract_strided_slice %417 {offsets = [1, 0], sizes = [1, 256], strides = [1, 1]} : vector<2x256xf32> to vector<1x256xf32>
    %425 = vector.broadcast %419 : f32 to vector<1x256xf32>
    %426 = arith.mulf %425, %424 : vector<1x256xf32>
    %427 = arith.addf %423, %426 : vector<1x256xf32>
    %c0_71 = arith.constant 0 : index
    %c98 = arith.constant 98 : index
    %428 = vector.load %arg5[%c0_71, %c98] : memref<2x435xf32, #tpu.memory_space<vmem>>, vector<2x256xf32>
    %c12 = arith.constant 12 : index
    %429 = memref.load %arg1[%c12] : memref<99xf32, #tpu.memory_space<smem>>
    %c61 = arith.constant 61 : index
    %430 = memref.load %arg1[%c61] : memref<99xf32, #tpu.memory_space<smem>>
    %431 = vector.extract_strided_slice %428 {offsets = [0, 0], sizes = [1, 256], strides = [1, 1]} : vector<2x256xf32> to vector<1x256xf32>
    %432 = vector.broadcast %429 : f32 to vector<1x256xf32>
    %433 = arith.mulf %432, %431 : vector<1x256xf32>
    %434 = arith.addf %427, %433 : vector<1x256xf32>
    %435 = vector.extract_strided_slice %428 {offsets = [1, 0], sizes = [1, 256], strides = [1, 1]} : vector<2x256xf32> to vector<1x256xf32>
    %436 = vector.broadcast %430 : f32 to vector<1x256xf32>
    %437 = arith.mulf %436, %435 : vector<1x256xf32>
    %438 = arith.addf %434, %437 : vector<1x256xf32>
    %c0_72 = arith.constant 0 : index
    %c114 = arith.constant 114 : index
    %439 = vector.load %arg5[%c0_72, %c114] : memref<2x435xf32, #tpu.memory_space<vmem>>, vector<2x256xf32>
    %c19 = arith.constant 19 : index
    %440 = memref.load %arg1[%c19] : memref<99xf32, #tpu.memory_space<smem>>
    %c68 = arith.constant 68 : index
    %441 = memref.load %arg1[%c68] : memref<99xf32, #tpu.memory_space<smem>>
    %442 = vector.extract_strided_slice %439 {offsets = [0, 0], sizes = [1, 256], strides = [1, 1]} : vector<2x256xf32> to vector<1x256xf32>
    %443 = vector.broadcast %440 : f32 to vector<1x256xf32>
    %444 = arith.mulf %443, %442 : vector<1x256xf32>
    %445 = arith.addf %438, %444 : vector<1x256xf32>
    %446 = vector.extract_strided_slice %439 {offsets = [1, 0], sizes = [1, 256], strides = [1, 1]} : vector<2x256xf32> to vector<1x256xf32>
    %447 = vector.broadcast %441 : f32 to vector<1x256xf32>
    %448 = arith.mulf %447, %446 : vector<1x256xf32>
    %449 = arith.addf %445, %448 : vector<1x256xf32>
    %c0_73 = arith.constant 0 : index
    %c130 = arith.constant 130 : index
    %450 = vector.load %arg5[%c0_73, %c130] : memref<2x435xf32, #tpu.memory_space<vmem>>, vector<2x256xf32>
    %c26 = arith.constant 26 : index
    %451 = memref.load %arg1[%c26] : memref<99xf32, #tpu.memory_space<smem>>
    %c75 = arith.constant 75 : index
    %452 = memref.load %arg1[%c75] : memref<99xf32, #tpu.memory_space<smem>>
    %453 = vector.extract_strided_slice %450 {offsets = [0, 0], sizes = [1, 256], strides = [1, 1]} : vector<2x256xf32> to vector<1x256xf32>
    %454 = vector.broadcast %451 : f32 to vector<1x256xf32>
    %455 = arith.mulf %454, %453 : vector<1x256xf32>
    %456 = arith.addf %449, %455 : vector<1x256xf32>
    %457 = vector.extract_strided_slice %450 {offsets = [1, 0], sizes = [1, 256], strides = [1, 1]} : vector<2x256xf32> to vector<1x256xf32>
    %458 = vector.broadcast %452 : f32 to vector<1x256xf32>
    %459 = arith.mulf %458, %457 : vector<1x256xf32>
    %460 = arith.addf %456, %459 : vector<1x256xf32>
    %c0_74 = arith.constant 0 : index
    %c146 = arith.constant 146 : index
    %461 = vector.load %arg5[%c0_74, %c146] : memref<2x435xf32, #tpu.memory_space<vmem>>, vector<2x256xf32>
    %c33 = arith.constant 33 : index
    %462 = memref.load %arg1[%c33] : memref<99xf32, #tpu.memory_space<smem>>
    %c82_75 = arith.constant 82 : index
    %463 = memref.load %arg1[%c82_75] : memref<99xf32, #tpu.memory_space<smem>>
    %464 = vector.extract_strided_slice %461 {offsets = [0, 0], sizes = [1, 256], strides = [1, 1]} : vector<2x256xf32> to vector<1x256xf32>
    %465 = vector.broadcast %462 : f32 to vector<1x256xf32>
    %466 = arith.mulf %465, %464 : vector<1x256xf32>
    %467 = arith.addf %460, %466 : vector<1x256xf32>
    %468 = vector.extract_strided_slice %461 {offsets = [1, 0], sizes = [1, 256], strides = [1, 1]} : vector<2x256xf32> to vector<1x256xf32>
    %469 = vector.broadcast %463 : f32 to vector<1x256xf32>
    %470 = arith.mulf %469, %468 : vector<1x256xf32>
    %471 = arith.addf %467, %470 : vector<1x256xf32>
    %c0_76 = arith.constant 0 : index
    %c162 = arith.constant 162 : index
    %472 = vector.load %arg5[%c0_76, %c162] : memref<2x435xf32, #tpu.memory_space<vmem>>, vector<2x256xf32>
    %c40 = arith.constant 40 : index
    %473 = memref.load %arg1[%c40] : memref<99xf32, #tpu.memory_space<smem>>
    %c89 = arith.constant 89 : index
    %474 = memref.load %arg1[%c89] : memref<99xf32, #tpu.memory_space<smem>>
    %475 = vector.extract_strided_slice %472 {offsets = [0, 0], sizes = [1, 256], strides = [1, 1]} : vector<2x256xf32> to vector<1x256xf32>
    %476 = vector.broadcast %473 : f32 to vector<1x256xf32>
    %477 = arith.mulf %476, %475 : vector<1x256xf32>
    %478 = arith.addf %471, %477 : vector<1x256xf32>
    %479 = vector.extract_strided_slice %472 {offsets = [1, 0], sizes = [1, 256], strides = [1, 1]} : vector<2x256xf32> to vector<1x256xf32>
    %480 = vector.broadcast %474 : f32 to vector<1x256xf32>
    %481 = arith.mulf %480, %479 : vector<1x256xf32>
    %482 = arith.addf %478, %481 : vector<1x256xf32>
    %c0_77 = arith.constant 0 : index
    %c178 = arith.constant 178 : index
    %483 = vector.load %arg5[%c0_77, %c178] : memref<2x435xf32, #tpu.memory_space<vmem>>, vector<2x256xf32>
    %c47 = arith.constant 47 : index
    %484 = memref.load %arg1[%c47] : memref<99xf32, #tpu.memory_space<smem>>
    %c96_78 = arith.constant 96 : index
    %485 = memref.load %arg1[%c96_78] : memref<99xf32, #tpu.memory_space<smem>>
    %486 = vector.extract_strided_slice %483 {offsets = [0, 0], sizes = [1, 256], strides = [1, 1]} : vector<2x256xf32> to vector<1x256xf32>
    %487 = vector.broadcast %484 : f32 to vector<1x256xf32>
    %488 = arith.mulf %487, %486 : vector<1x256xf32>
    %489 = arith.addf %482, %488 : vector<1x256xf32>
    %490 = vector.extract_strided_slice %483 {offsets = [1, 0], sizes = [1, 256], strides = [1, 1]} : vector<2x256xf32> to vector<1x256xf32>
    %491 = vector.broadcast %485 : f32 to vector<1x256xf32>
    %492 = arith.mulf %491, %490 : vector<1x256xf32>
    %493 = arith.addf %489, %492 : vector<1x256xf32>
    %c5_79 = arith.constant 5 : index
    %c0_80 = arith.constant 0 : index
    %494 = vector.load %arg2[%c5_79, %c0_80] : memref<7x256xf32, #tpu.memory_space<vmem>>, vector<1x256xf32>
    %495 = arith.mulf %493, %494 : vector<1x256xf32>
    %496 = arith.addf %415, %495 : vector<1x256xf32>
    %cst_81 = arith.constant 0.000000e+00 : f32
    %497 = vector.broadcast %cst_81 : f32 to vector<1x256xf32>
    %c0_82 = arith.constant 0 : index
    %c83 = arith.constant 83 : index
    %498 = vector.load %arg5[%c0_82, %c83] : memref<2x435xf32, #tpu.memory_space<vmem>>, vector<2x256xf32>
    %c6 = arith.constant 6 : index
    %499 = memref.load %arg1[%c6] : memref<99xf32, #tpu.memory_space<smem>>
    %c55 = arith.constant 55 : index
    %500 = memref.load %arg1[%c55] : memref<99xf32, #tpu.memory_space<smem>>
    %501 = vector.extract_strided_slice %498 {offsets = [0, 0], sizes = [1, 256], strides = [1, 1]} : vector<2x256xf32> to vector<1x256xf32>
    %502 = vector.broadcast %499 : f32 to vector<1x256xf32>
    %503 = arith.mulf %502, %501 : vector<1x256xf32>
    %504 = arith.addf %497, %503 : vector<1x256xf32>
    %505 = vector.extract_strided_slice %498 {offsets = [1, 0], sizes = [1, 256], strides = [1, 1]} : vector<2x256xf32> to vector<1x256xf32>
    %506 = vector.broadcast %500 : f32 to vector<1x256xf32>
    %507 = arith.mulf %506, %505 : vector<1x256xf32>
    %508 = arith.addf %504, %507 : vector<1x256xf32>
    %c0_83 = arith.constant 0 : index
    %c99 = arith.constant 99 : index
    %509 = vector.load %arg5[%c0_83, %c99] : memref<2x435xf32, #tpu.memory_space<vmem>>, vector<2x256xf32>
    %c13 = arith.constant 13 : index
    %510 = memref.load %arg1[%c13] : memref<99xf32, #tpu.memory_space<smem>>
    %c62 = arith.constant 62 : index
    %511 = memref.load %arg1[%c62] : memref<99xf32, #tpu.memory_space<smem>>
    %512 = vector.extract_strided_slice %509 {offsets = [0, 0], sizes = [1, 256], strides = [1, 1]} : vector<2x256xf32> to vector<1x256xf32>
    %513 = vector.broadcast %510 : f32 to vector<1x256xf32>
    %514 = arith.mulf %513, %512 : vector<1x256xf32>
    %515 = arith.addf %508, %514 : vector<1x256xf32>
    %516 = vector.extract_strided_slice %509 {offsets = [1, 0], sizes = [1, 256], strides = [1, 1]} : vector<2x256xf32> to vector<1x256xf32>
    %517 = vector.broadcast %511 : f32 to vector<1x256xf32>
    %518 = arith.mulf %517, %516 : vector<1x256xf32>
    %519 = arith.addf %515, %518 : vector<1x256xf32>
    %c0_84 = arith.constant 0 : index
    %c115 = arith.constant 115 : index
    %520 = vector.load %arg5[%c0_84, %c115] : memref<2x435xf32, #tpu.memory_space<vmem>>, vector<2x256xf32>
    %c20 = arith.constant 20 : index
    %521 = memref.load %arg1[%c20] : memref<99xf32, #tpu.memory_space<smem>>
    %c69 = arith.constant 69 : index
    %522 = memref.load %arg1[%c69] : memref<99xf32, #tpu.memory_space<smem>>
    %523 = vector.extract_strided_slice %520 {offsets = [0, 0], sizes = [1, 256], strides = [1, 1]} : vector<2x256xf32> to vector<1x256xf32>
    %524 = vector.broadcast %521 : f32 to vector<1x256xf32>
    %525 = arith.mulf %524, %523 : vector<1x256xf32>
    %526 = arith.addf %519, %525 : vector<1x256xf32>
    %527 = vector.extract_strided_slice %520 {offsets = [1, 0], sizes = [1, 256], strides = [1, 1]} : vector<2x256xf32> to vector<1x256xf32>
    %528 = vector.broadcast %522 : f32 to vector<1x256xf32>
    %529 = arith.mulf %528, %527 : vector<1x256xf32>
    %530 = arith.addf %526, %529 : vector<1x256xf32>
    %c0_85 = arith.constant 0 : index
    %c131 = arith.constant 131 : index
    %531 = vector.load %arg5[%c0_85, %c131] : memref<2x435xf32, #tpu.memory_space<vmem>>, vector<2x256xf32>
    %c27 = arith.constant 27 : index
    %532 = memref.load %arg1[%c27] : memref<99xf32, #tpu.memory_space<smem>>
    %c76 = arith.constant 76 : index
    %533 = memref.load %arg1[%c76] : memref<99xf32, #tpu.memory_space<smem>>
    %534 = vector.extract_strided_slice %531 {offsets = [0, 0], sizes = [1, 256], strides = [1, 1]} : vector<2x256xf32> to vector<1x256xf32>
    %535 = vector.broadcast %532 : f32 to vector<1x256xf32>
    %536 = arith.mulf %535, %534 : vector<1x256xf32>
    %537 = arith.addf %530, %536 : vector<1x256xf32>
    %538 = vector.extract_strided_slice %531 {offsets = [1, 0], sizes = [1, 256], strides = [1, 1]} : vector<2x256xf32> to vector<1x256xf32>
    %539 = vector.broadcast %533 : f32 to vector<1x256xf32>
    %540 = arith.mulf %539, %538 : vector<1x256xf32>
    %541 = arith.addf %537, %540 : vector<1x256xf32>
    %c0_86 = arith.constant 0 : index
    %c147 = arith.constant 147 : index
    %542 = vector.load %arg5[%c0_86, %c147] : memref<2x435xf32, #tpu.memory_space<vmem>>, vector<2x256xf32>
    %c34 = arith.constant 34 : index
    %543 = memref.load %arg1[%c34] : memref<99xf32, #tpu.memory_space<smem>>
    %c83_87 = arith.constant 83 : index
    %544 = memref.load %arg1[%c83_87] : memref<99xf32, #tpu.memory_space<smem>>
    %545 = vector.extract_strided_slice %542 {offsets = [0, 0], sizes = [1, 256], strides = [1, 1]} : vector<2x256xf32> to vector<1x256xf32>
    %546 = vector.broadcast %543 : f32 to vector<1x256xf32>
    %547 = arith.mulf %546, %545 : vector<1x256xf32>
    %548 = arith.addf %541, %547 : vector<1x256xf32>
    %549 = vector.extract_strided_slice %542 {offsets = [1, 0], sizes = [1, 256], strides = [1, 1]} : vector<2x256xf32> to vector<1x256xf32>
    %550 = vector.broadcast %544 : f32 to vector<1x256xf32>
    %551 = arith.mulf %550, %549 : vector<1x256xf32>
    %552 = arith.addf %548, %551 : vector<1x256xf32>
    %c0_88 = arith.constant 0 : index
    %c163 = arith.constant 163 : index
    %553 = vector.load %arg5[%c0_88, %c163] : memref<2x435xf32, #tpu.memory_space<vmem>>, vector<2x256xf32>
    %c41 = arith.constant 41 : index
    %554 = memref.load %arg1[%c41] : memref<99xf32, #tpu.memory_space<smem>>
    %c90 = arith.constant 90 : index
    %555 = memref.load %arg1[%c90] : memref<99xf32, #tpu.memory_space<smem>>
    %556 = vector.extract_strided_slice %553 {offsets = [0, 0], sizes = [1, 256], strides = [1, 1]} : vector<2x256xf32> to vector<1x256xf32>
    %557 = vector.broadcast %554 : f32 to vector<1x256xf32>
    %558 = arith.mulf %557, %556 : vector<1x256xf32>
    %559 = arith.addf %552, %558 : vector<1x256xf32>
    %560 = vector.extract_strided_slice %553 {offsets = [1, 0], sizes = [1, 256], strides = [1, 1]} : vector<2x256xf32> to vector<1x256xf32>
    %561 = vector.broadcast %555 : f32 to vector<1x256xf32>
    %562 = arith.mulf %561, %560 : vector<1x256xf32>
    %563 = arith.addf %559, %562 : vector<1x256xf32>
    %c0_89 = arith.constant 0 : index
    %c179 = arith.constant 179 : index
    %564 = vector.load %arg5[%c0_89, %c179] : memref<2x435xf32, #tpu.memory_space<vmem>>, vector<2x256xf32>
    %c48 = arith.constant 48 : index
    %565 = memref.load %arg1[%c48] : memref<99xf32, #tpu.memory_space<smem>>
    %c97_90 = arith.constant 97 : index
    %566 = memref.load %arg1[%c97_90] : memref<99xf32, #tpu.memory_space<smem>>
    %567 = vector.extract_strided_slice %564 {offsets = [0, 0], sizes = [1, 256], strides = [1, 1]} : vector<2x256xf32> to vector<1x256xf32>
    %568 = vector.broadcast %565 : f32 to vector<1x256xf32>
    %569 = arith.mulf %568, %567 : vector<1x256xf32>
    %570 = arith.addf %563, %569 : vector<1x256xf32>
    %571 = vector.extract_strided_slice %564 {offsets = [1, 0], sizes = [1, 256], strides = [1, 1]} : vector<2x256xf32> to vector<1x256xf32>
    %572 = vector.broadcast %566 : f32 to vector<1x256xf32>
    %573 = arith.mulf %572, %571 : vector<1x256xf32>
    %574 = arith.addf %570, %573 : vector<1x256xf32>
    %c6_91 = arith.constant 6 : index
    %c0_92 = arith.constant 0 : index
    %575 = vector.load %arg2[%c6_91, %c0_92] : memref<7x256xf32, #tpu.memory_space<vmem>>, vector<1x256xf32>
    %576 = arith.mulf %574, %575 : vector<1x256xf32>
    %577 = arith.addf %496, %576 : vector<1x256xf32>
    %c98_93 = arith.constant 98 : index
    %578 = memref.load %arg1[%c98_93] : memref<99xf32, #tpu.memory_space<smem>>
    %579 = vector.broadcast %578 : f32 to vector<1x256xf32>
    %580 = arith.addf %577, %579 : vector<1x256xf32>
    %581 = arith.negf %580 : vector<1x256xf32>
    %582 = math.exp %581 : vector<1x256xf32>
    %cst_94 = arith.constant 1.000000e+00 : f32
    %583 = vector.broadcast %cst_94 : f32 to vector<1x256xf32>
    %584 = arith.addf %583, %582 : vector<1x256xf32>
    %585 = arith.divf %583, %584 : vector<1x256xf32>
    %586 = vector.broadcast %585 : vector<1x256xf32> to vector<4x256xf32>
    %587 = arith.mulf %1, %586 : vector<4x256xf32>
    %c0_95 = arith.constant 0 : index
    %c0_96 = arith.constant 0 : index
    %c0_97 = arith.constant 0 : index
    %588 = vector.load %arg4[%c0_95, %c0_96, %c0_97] : memref<1x4x256xf32, #tpu.memory_space<vmem>>, vector<1x4x256xf32>
    %589 = vector.shape_cast %588 : vector<1x4x256xf32> to vector<4x256xf32>
    %590 = vector.shape_cast %587 : vector<4x256xf32> to vector<1x4x256xf32>
    tpu.vector_store %arg4[%c0_95, %c0_96, %c0_97], %590 {strides = array<i32>} : memref<1x4x256xf32, #tpu.memory_space<vmem>>, vector<1x4x256xf32>,
    return
  }
  func.func @transform_0(%arg0: i32) -> i32 {
    %c0_i32 = arith.constant 0 : i32
    %c0_i32_0 = arith.constant 0 : i32
    return %c0_i32 : i32
  }
  func.func @transform_1(%arg0: i32) -> (i32, i32) {
    %c0_i32 = arith.constant 0 : i32
    %c0_i32_0 = arith.constant 0 : i32
    %c0_i32_1 = arith.constant 0 : i32
    return %c0_i32, %c0_i32_0 : i32, i32
  }
  func.func @transform_2(%arg0: i32) -> (i32, i32, i32) {
    %c0_i32 = arith.constant 0 : i32
    %c0_i32_0 = arith.constant 0 : i32
    %c0_i32_1 = arith.constant 0 : i32
    return %arg0, %c0_i32, %c0_i32_0 : i32, i32, i32
  }
  func.func @transform_3(%arg0: i32) -> (i32, i32, i32) {
    %c0_i32 = arith.constant 0 : i32
    %c0_i32_0 = arith.constant 0 : i32
    %c0_i32_1 = arith.constant 0 : i32
    return %arg0, %c0_i32, %c0_i32_0 : i32, i32, i32
  }
}

</mosaic_0001>

<bundles_post_ra>
// kernel: tpu_custom_call.1
= control target key start
LH: loop header
LB: loop body
LE: loop exit
PB: predicated region body
PF: predicated region fallthrough
CT: control target
= control target key end

     0   :  { %8 = vsyncpa [#allocation6], 0  ;;  %s2799_s0 = inlined_call_operand.hbm [shape: f32[99], index: 0, kind: input, shape index: {}]   ;;  %s2800_s1 = inlined_call_operand.hbm [shape: f32[7,256], index: 1, kind: input, shape index: {}]   ;;  %s2801_s2 = inlined_call_operand.hbm [shape: f32[2,4,256], index: 2, kind: input, shape index: {}]   ;;  %s2802_s3 = inlined_call_operand.hbm [shape: f32[2,4,256], index: 3, kind: output, shape index: {}]  }
   0x1   :  { %9 = vsyncpa [#allocation4], 0 }
   0x2   :  { %10 = vsyncpa [#allocation9], 0 }
   0x3   :  { %12 = vsyncpa [#allocation9 + $0x1], 0 }
   0x4   :  { %13 = vsyncpa [#allocation5], 0 }
   0x5   :  { %15 = vsyncpa [#allocation5 + $0x1], 0  ;;  %s2064_s12 = smov 0   ;;  %s2066_s13 = smov 0  }
   0x6   :  { %s2068_s14 = smov 0   ;;  %s2070_s15 = smov 0  }
   0x7 LB: > { %s2085_s16 = sadd.s32 4294967295, %s2018_s15   ;;  %s1604_s17 = sadd.s32 4294967294, %s2018_s15   ;;  %s2018_s15 = sphi %s2070_s15, %s2812_s15   ;;  %s2014_s14 = sphi %s2068_s14, %s2811_s14   ;;  %s2010_s13 = sphi %s2066_s13, %s2810_s13   ;;  %s2006_s12 = sphi %s2064_s12, %s2809_s12  }
   0x8   : > { %p83_p0 = scmp.ne.s32.totalorder %s2010_s13, %s2006_s12  ;;  %p84_p1 = scmp.eq.s32.totalorder %s2085_s16, 0 }
   0x9   : > { %p107_p2 = scmp.eq.s32.totalorder %s2085_s16, 1  ;;  %p113_p3 = scmp.eq.s32.totalorder %s1604_s17, 1 }
   0xa   : > { %p2094_p4 = por %p84_p1, %p83_p0  ;;  %p1605_p5 = scmp.ge.s32.totalorder %s2018_s15, 1 }
   0xb   : > { %p2099_p6 = por %p113_p3, %p83_p0  ;;  %p120_p7 = scmp.lt.s32.totalorder %s2018_s15, 3 }
   0xc   : > { %s132_s22 = sshll.u32 %s2799_s0, 4  ;;  %s142_s26 = sshll.u32 %s2800_s1, 4  ;;  %s133_s22 = int_to_ptr.hbm [resolvable:$true] %s132_s22  ;;  %s143_s26 = int_to_ptr.hbm [resolvable:$true] %s142_s26 }
   0xd   : > { %p2107_p8 = pnand %p1605_p5, %p120_p7  ;;  %s2020_s27 = smov [#allocation7]  }
   0xe   : > { %s144_s28 = sshll.u32 %s2020_s27, 4  ;;  %s2021_s29 = smov [#allocation3]   ;;  %s145_s28 = int_to_ptr.vmem [resolvable:$true] %s144_s28 }
   0xf   : > { %p1784_p10 = pneg %p2107_p8  ;;  %s2120_s30 = sadd.s32 1, %s2018_s15  }
  0x10   : > { %s70_s4 = sadd.s32 1, %s2014_s14  ;;  %s67_s5 = ssub.s32 %s2018_s15, %s2120_s30 }
  0x11   : > { %p1785_p11 = pnand %p1784_p10, %p84_p1  ;;  %p77_p12 = scmp.ne.s32.totalorder %s2014_s14, %s2010_s13 }
  0x12   : > { %p68_p13 = scmp.eq.s32.totalorder %s67_s5, 0  ;;  %p78_p0 = scmp.eq.s32.totalorder %s2018_s15, 0 }
  0x13   : > { %1787 = dma.hbm_to_smem (!%p1785_p11), %s133_s22, 16, %s2021_s29, [#allocation6]  }
  0x14   : > { %1790 = dma.hbm_to_vmem [thread:$0]  (!%p1785_p11), %s143_s26, 256, %s145_s28, [#allocation4]  }
  0x15   : > { %p2130_p3 = por %p107_p2, %p77_p12  ;;  %p1801_p5 = scmp.lt.s32.totalorder %s2018_s15, 2 }
  0x16   : > { %s2136_s7 = scalar_select %p68_p13, %s2014_s14, %s70_s4  }
  0x17   : > { %p79_p7 = por %p78_p0, %p77_p12  ;;  %s155_s8 = sand.u32 1, %s2014_s14  }
  0x18   : > { %s1609_s9 = sshll.u32 %s155_s8, 3  ;;  %s1770_s10 = sshll.u32 %s2018_s15, 3 }
  0x19   : > { %s164_s20 = scalar_lea.hbm %s2801_s2, %s1770_s10  ;;  %s159_s21 = scalar_lea.vmem [#allocation8], %s1609_s9 }
  0x1a   : > { %s168_s22 = sshll.u32 %s159_s21, 4  ;;  %s166_s24 = sshll.u32 %s164_s20, 4  ;;  %s169_s22 = int_to_ptr.vmem [resolvable:$true] %s168_s22  ;;  %s167_s24 = int_to_ptr.hbm [resolvable:$true] %s166_s24 }
  0x1b   : > { %p2143_p2 = pnand %p1801_p5, %p79_p7  ;;  %s156_s26 = scalar_lea.sflag [#allocation9], %s155_s8 }
  0x1c   : > { %s1914_s27 = sshra.s32 %s167_s24, 4  ;;  %s1921_s5 = scalar_lea.hbm %s2801_s2, 16  ;;  %s1915_s27 = int_to_ptr.hbm [resolvable:$true] %s1914_s27 }
  0x1d   : > { %s1916_s28 = scalar_lea.hbm %s1915_s27, 8  ;;  %p1918_p11 = pneg %p2143_p2 }
  0x1e   : > { %p1917_p10 = scmp.ne.s32.totalorder %s1915_s27, %s1916_s28  ;;  %p1922_p0 = scmp.lt.s32.totalorder %s1915_s27, %s2801_s2 }
  0x1f   : > { %p1923_p5 = scmp.lt.s32.totalorder %s1921_s5, %s1916_s28 }
  0x20   : > { %p1919_p12 = pnand %p1918_p11, %p1917_p10 }
  0x21   : > { %p1924_p7 = por %p1923_p5, %p1922_p0 }
  0x22   : > { %p1920_p13 = pneg %p1919_p12 }
  0x24   : > { %p1925_p9 = pnand %p1924_p7, %p1920_p13 }
  0x26   : > { %1928 = shalt.err (!%p1925_p9)
}
  0x27   : > { %1794 = dma.hbm_to_vmem [thread:$0]  (!%p2143_p2), %s167_s24, 128, %s169_s22, %s156_s26  }
  0x28   : > { %177 = sbr.rel (%p2107_p8) target bundleno = 732 (0x2dc), region = 32 }
  0x2d   : > { %1989 = dma.done.wait (%p84_p1), [#allocation6], 16  }
  0x2e   : > { %1991 = vsyncadd (%p84_p1), [#allocation6], 4294967280 }
  0x2f   : > { %1993 = dma.done.wait (%p84_p1), [#allocation4], 256  }
  0x30   : > { %1995 = vsyncadd (%p84_p1), [#allocation4], 4294967040  ;;  %s2168_s8 = sand.u32 1, %s2010_s13  }
  0x31   : > { %s1615_s23 = sshll.u32 %s2168_s8, 3  ;;  %s190_s11 = scalar_lea.sflag [#allocation9], %s2168_s8 }
  0x32   : > { %s193_s17 = scalar_lea.vmem [#allocation8], %s1615_s23 }
  0x33   : > { %1997 = dma.done.wait (%p2094_p4), %s190_s11, 128  }
  0x34   : > { %1999 = vsyncadd (%p2094_p4), %s190_s11, 4294967168 }
  0x35   : > { %199 = sfence }
  0x36   : > { %v447_v0 = vld [vmem:[#allocation7] ss:$8 sm:$0x3]  ;;  %v2022_v1 = vmov 857870592   ;;  %v2178_v3 = vld [vmem:[%s193_s17] sm:$0xff]  ;;  %v282_v34 = vlaneseq }
  0x37   : > { %v450_v2 = vunpack.c.l.s4 %v2022_v1  ;;  %vm268_vm0 = vcmask 1041408   ;;  %220 = vst [vmem:[#allocation1] ss:$2 sm:$0xff] %v2178_v3  ;;  %v2023_v4 = vmov 4.0   ;;  %vm269_vm1 = vcmask 1043458   ;;  %s2025_s18 = smov 77  }
  0x38   : > { %1861 = vrcp.f32 %v2023_v4  ;;  %vm271_vm2 = vcmask 1045508   ;;  %vm273_vm3 = vcmask 416774   ;;  %vm270_vm4 = vmor %vm269_vm1, %vm268_vm0  ;;  %v2024_v7 = vmov 0.0   ;;  %s1625_s20 = sld [smem:[#allocation3 + $0x15]]  ;;  %s2026_s27 = smov 80  }
  0x39   : > { %v2181_v5 = vunpack.c.0.s8 %v450_v2  ;;  %vm272_vm5 = vmor %vm271_vm2, %vm270_vm4  ;;  %vm225_vm7 = vcmask 1043456   ;;  %vm279_vm9 = vcmask 1040384   ;;  %vm284_vm10 = vcmp.lt.s32.totalorder %v282_v34, 256  ;;  %s1622_s21 = sld [smem:[#allocation3 + $0xe]]  ;;  %s2027_s28 = smov 96  }
  0x3a   : > { %vm274_vm6 = vmor %vm273_vm3, %vm272_vm5  ;;  %s1619_s22 = sld [smem:[#allocation3 + $0x7]]  ;;  %s2028_s4 = smov 112   ;;  %vm316_vm11 = vcmask 916480   ;;  %vm339_vm12 = vcmask 785408   ;;  %vm362_vm13 = vcmask 654336   ;;  %vm386_vm14 = vcmask 523264  }
  0x3b   : > { %v452_v6 = vperm.slane %v447_v0, %v2181_v5  ;;  %275 = vst.msk [vmem:[#allocation2] sm:$0xff] %vm274_vm6, %v2024_v7  ;;  %s1631_s24 = sld [smem:[#allocation3 + $0x23]]  ;;  %vm409_vm15 = vcmask 392192   ;;  %vm432_vm0 = vcmask 261120   ;;  %vm456_vm1 = vcmask 629760  }
  0x3c   : > { %s1634_s25 = sld [smem:[#allocation3 + $0x2a]]  ;;  %vm615_vm2 = vcmask 637952   ;;  %vm623_vm3 = vcmask 1039360   ;;  %vm781_vm4 = vcmask 646144   ;;  %vm1100_vm5 = vcmask 662528  }
  0x3d   : > { %453 = vrot.lane.b32.xlu0 %v452_v6, %s2025_s18  ;;  %s1628_s26 = sld [smem:[#allocation3 + $0x1c]]  ;;  %s2029_s18 = smov 48   ;;  %vm1266_vm6 = vcmask 670720  }
  0x3e   : > { %v1862_v8 = vpop.eup %1861  ;;  %v221_v9 = vld.sshfl [vmem:[#allocation1] sm:$0xff pattern:$0x75316420]  ;;  %v222_v10 = vld.sshfl [vmem:[#allocation1 + $0x8] sm:$0xff pattern:$0x75316420]  ;;  %v356_v53 = vstv %s1625_s20 }
  0x3f   : > { %v226_v11 = vsel %vm225_vm7, %v221_v9, 0.0  ;;  %v233_v12 = vsel %vm225_vm7, %v222_v10, 0.0  ;;  %v241_v13 = vmul.f32 4.0, %v1862_v8  ;;  %249 = vst [vmem:[#allocation1] ss:$2 sm:$0xff] %v2178_v3  ;;  %vm245_vm8 = vweird.f32 %v1862_v8  ;;  %s1646_s29 = sld [smem:[#allocation3 + $0x16]] }
  0x40   : > { %v227_v14 = vrot.slane %v226_v11, 4  ;;  %v234_v15 = vrot.slane %v233_v12, 4  ;;  %v333_v54 = vstv %s1622_s21  ;;  %v310_v55 = vstv %s1619_s22  ;;  %s1640_s5 = sld [smem:[#allocation3 + $0x8]]  ;;  %s2030_s20 = smov 32  }
  0x41   : > { %v242_v16 = vsub.f32 1.0, %v241_v13  ;;  %v403_v61 = vstv %s1631_s24  ;;  %s1643_s9 = sld [smem:[#allocation3 + $0xf]]  ;;  %s2031_s21 = smov 64  }
  0x42   : > { %v228_v17 = vadd.f32 %v227_v14, %v226_v11  ;;  %v235_v18 = vadd.f32 %v234_v15, %v233_v12  ;;  %v426_v62 = vstv %s1634_s25  ;;  %s1626_s10 = sld [smem:[#allocation3 + $0x46]] }
  0x43   : > { %v243_v19 = vmul.f32 %v1862_v8, %v242_v16  ;;  %v380_v63 = vstv %s1628_s26  ;;  %s1623_s11 = sld [smem:[#allocation3 + $0x3f]] }
  0x44   : > { %v229_v20 = vrot.slane %v228_v17, 2  ;;  %v236_v21 = vrot.slane %v235_v18, 2  ;;  %s1620_s17 = sld [smem:[#allocation3 + $0x38]] }
  0x45   : > { %v244_v22 = vadd.f32 %v1862_v8, %v243_v19  ;;  %v519_v4 = vstv %s1646_s29  ;;  %s1635_s22 = sld [smem:[#allocation3 + $0x5b]] }
  0x46   : > { %v230_v23 = vadd.f32 %v229_v20, %v228_v17  ;;  %v237_v24 = vadd.f32 %v236_v21, %v235_v18  ;;  %v250_v25 = vld.sshfl [vmem:[#allocation1] sm:$0xff pattern:$0x75316420]  ;;  %v251_v26 = vld.sshfl [vmem:[#allocation1 + $0x8] sm:$0xff pattern:$0x75316420]  ;;  %v475_v6 = vstv %s1640_s5 }
  0x47   : > { %v254_v27 = vsel %vm225_vm7, %v250_v25, -inf  ;;  %v261_v28 = vsel %vm225_vm7, %v251_v26, -inf  ;;  %v246_v33 = vsel %vm245_vm8, %v1862_v8, %v244_v22  ;;  %v497_v7 = vstv %s1643_s9  ;;  %s1629_s24 = sld [smem:[#allocation3 + $0x4d]] }
  0x48   : > { %v231_v29 = vrot.slane %v230_v23, 1  ;;  %v238_v30 = vrot.slane %v237_v24, 1  ;;  %v255_v31 = vrot.slane %v254_v27, 4  ;;  %v262_v32 = vrot.slane %v261_v28, 4  ;;  %s1632_s25 = sld [smem:[#allocation3 + $0x54]] }
  0x49   : > { %v366_v11 = vstv %s1626_s10  ;;  %v343_v12 = vstv %s1623_s11  ;;  %s1641_s26 = sld [smem:[#allocation3 + $0x39]]  ;;  %vm1432_vm8 = vcmask 678912  }
  0x4a   : > { %v232_v35 = vadd.f32 %v231_v29, %v230_v23  ;;  %v239_v36 = vadd.f32 %v238_v30, %v237_v24  ;;  %v256_v37 = vmax.f32 %v254_v27, %v255_v31  ;;  %v263_v38 = vmax.f32 %v261_v28, %v262_v32  ;;  %s1644_s29 = sld [smem:[#allocation3 + $0x40]] }
  0x4b   : > { %v320_v13 = vstv %s1620_s17  ;;  %v436_v20 = vstv %s1635_s22  ;;  %s1647_s5 = sld [smem:[#allocation3 + $0x47]] }
  0x4c   : > { %v247_v39 = vmul.f32 %v246_v33, %v232_v35  ;;  %v248_v40 = vmul.f32 %v246_v33, %v239_v36  ;;  %v257_v41 = vrot.slane %v256_v37, 2  ;;  %v264_v42 = vrot.slane %v263_v38, 2  ;;  %s1650_s9 = sld [smem:[#allocation3 + $0x4e]] }
  0x4d   : > { %v390_v21 = vstv %s1629_s24  ;;  %s1649_s10 = sld [smem:[#allocation3 + $0x1d]] }
  0x4e   : > { %v258_v43 = vmax.f32 %v256_v37, %v257_v41  ;;  %v265_v44 = vmax.f32 %v263_v38, %v264_v42  ;;  %v278_v45 = vrot.slane %v248_v40, 7  ;;  %v413_v22 = vstv %s1632_s25  ;;  %s1652_s11 = sld [smem:[#allocation3 + $0x24]] }
  0x4f   : > { %v484_v29 = vstv %s1641_s26  ;;  %s1653_s17 = sld [smem:[#allocation3 + $0x55]] }
  0x50   : > { %v259_v46 = vrot.slane %v258_v43, 1  ;;  %v266_v47 = vrot.slane %v265_v44, 1  ;;  %v280_v48 = vsel %vm279_vm9, %v247_v39, %v278_v45  ;;  %v506_v30 = vstv %s1644_s29  ;;  %s1656_s22 = sld [smem:[#allocation3 + $0x5c]] }
  0x51   : > { %287 = vst.msk [vmem:[#allocation2 + $0x2] ss:$2 sm:$0x3] %vm284_vm10, %v280_v48  ;;  %v528_v31 = vstv %s1647_s5  ;;  %s1655_s24 = sld [smem:[#allocation3 + $0x2b]] }
  0x52   : > { %v260_v49 = vmax.f32 %v258_v43, %v259_v46  ;;  %v267_v50 = vmax.f32 %v265_v44, %v266_v47  ;;  %v550_v38 = vstv %s1650_s9  ;;  %s1664_s25 = sld [smem:[#allocation3 + $0x10]] }
  0x53   : > { %v541_v40 = vstv %s1649_s10  ;;  %s1661_s26 = sld [smem:[#allocation3 + $0x9]] }
  0x54   : > { %v290_v51 = vrot.slane %v267_v50, 7  ;;  %v563_v41 = vstv %s1652_s11  ;;  %s1662_s29 = sld [smem:[#allocation3 + $0x3a]]  ;;  %s2032_s11 = smov 78  }
  0x55   : > { %v572_v45 = vstv %s1653_s17  ;;  %s1665_s5 = sld [smem:[#allocation3 + $0x41]] }
  0x56   : > { %v291_v52 = vsel %vm279_vm9, %v260_v49, %v290_v51  ;;  %v594_v46 = vstv %s1656_s22  ;;  %s1682_s9 = sld [smem:[#allocation3 + $0xa]]  ;;  %vm789_vm9 = vcmask 1031168  }
  0x57   : > { %294 = vst.msk [vmem:[#allocation2 + $0x3] ss:$2 sm:$0x3] %vm284_vm10, %v291_v52  ;;  %v585_v48 = vstv %s1655_s24  ;;  %s1704_s10 = sld [smem:[#allocation3 + $0x3c]]  ;;  %vm942_vm10 = vcmask 1022976  }
  0x58   : > { %s1667_s17 = sld [smem:[#allocation3 + $0x17]] }
  0x59   : > { %s1703_s22 = sld [smem:[#allocation3 + $0xb]] }
  0x5a   : > { %s1683_s24 = sld [smem:[#allocation3 + $0x3b]] }
  0x5e   : > { %v2189_v56 = vld [vmem:[#allocation2] sm:$0x3f] }
  0x5f   : > { %v357_v57 = vmul.f32 %v356_v53, %v2189_v56  ;;  %v334_v58 = vmul.f32 %v333_v54, %v2189_v56  ;;  %v311_v59 = vmul.f32 %v310_v55, %v2189_v56  ;;  %v2197_v60 = vld [vmem:[#allocation2 + $0x2] sm:$0x3f]  ;;  %v520_v8 = vmul.f32 %v519_v4, %v2189_v56  ;;  %v606_v54 = vld [vmem:[#allocation7 + $0x1] ss:$8 sm:$0x3] }
  0x60   : > { %v404_v0 = vmul.f32 %v403_v61, %v2197_v60  ;;  %v427_v1 = vmul.f32 %v426_v62, %v2197_v60  ;;  %v381_v2 = vmul.f32 %v380_v63, %v2197_v60  ;;  %v476_v9 = vmul.f32 %v475_v6, %v2189_v56 }
  0x61   : > { %359 = vrot.lane.b32.xlu2 %v357_v57, %s2026_s27  ;;  %336 = vrot.lane.b32.xlu1 %v334_v58, %s2027_s28  ;;  %v498_v10 = vmul.f32 %v497_v7, %v2189_v56  ;;  %v367_v14 = vmul.f32 %v366_v11, %v2189_v56  ;;  %v344_v15 = vmul.f32 %v343_v12, %v2189_v56  ;;  %v663_v53 = vstv %s1664_s25  ;;  %s1706_s25 = sld [smem:[#allocation3 + $0x12]] }
  0x62   : > { %313 = vrot.lane.b32.xlu0 %v311_v59, %s2028_s4  ;;  %v321_v16 = vmul.f32 %v320_v13, %v2189_v56  ;;  %v437_v23 = vmul.f32 %v436_v20, %v2197_v60  ;;  %v391_v24 = vmul.f32 %v390_v21, %v2197_v60  ;;  %v414_v25 = vmul.f32 %v413_v22, %v2197_v60 }
  0x63   : > { %v1627_v17 = vrot.slane %v367_v14, 9  ;;  %v1624_v18 = vrot.slane %v344_v15, 9  ;;  %v485_v32 = vmul.f32 %v484_v29, %v2189_v56  ;;  %v507_v33 = vmul.f32 %v506_v30, %v2189_v56 }
  0x64   : > { %v1621_v19 = vrot.slane %v321_v16, 9  ;;  %v1636_v26 = vrot.slane %v437_v23, 9  ;;  %v1630_v27 = vrot.slane %v391_v24, 9  ;;  %v1633_v28 = vrot.slane %v414_v25, 9 }
  0x65   : > { %v529_v34 = vmul.f32 %v528_v31, %v2189_v56  ;;  %v1642_v35 = vrot.slane %v485_v32, 9  ;;  %v1645_v36 = vrot.slane %v507_v33, 9  ;;  %v551_v39 = vmul.f32 %v550_v38, %v2197_v60 }
  0x66   : > { %v542_v43 = vmul.f32 %v541_v40, %v2197_v60  ;;  %v564_v44 = vmul.f32 %v563_v41, %v2197_v60  ;;  %v573_v47 = vmul.f32 %v572_v45, %v2197_v60  ;;  %v595_v49 = vmul.f32 %v594_v46, %v2197_v60 }
  0x67   : > { %v1648_v37 = vrot.slane %v529_v34, 9  ;;  %v1651_v42 = vrot.slane %v551_v39, 9  ;;  %v586_v50 = vmul.f32 %v585_v48, %v2197_v60  ;;  %v641_v55 = vstv %s1661_s26  ;;  %s1724_s26 = sld [smem:[#allocation3 + $0xc]] }
  0x68   : > { %v1654_v51 = vrot.slane %v573_v47, 9  ;;  %v1657_v52 = vrot.slane %v595_v49, 9  ;;  %v664_v57 = vmul.f32 %v663_v53, %v2189_v56  ;;  %v611_v58 = vperm.slane %v606_v54, %v2181_v5 }
  0x69   : > { %406 = vrot.lane.b32.xlu2 %v404_v0, %s2029_s18  ;;  %429 = vrot.lane.b32.xlu1 %v427_v1, %s2030_s20  ;;  %v642_v59 = vmul.f32 %v641_v55, %v2189_v56  ;;  %v650_v61 = vstv %s1662_s29  ;;  %v672_v62 = vstv %s1665_s5  ;;  %s1668_s29 = sld [smem:[#allocation3 + $0x48]] }
  0x6a   : > { %383 = vrot.lane.b32.xlu0 %v381_v2, %s2031_s21  ;;  %v651_v63 = vmul.f32 %v650_v61, %v2189_v56  ;;  %v807_v0 = vstv %s1682_s9  ;;  %v673_v1 = vmul.f32 %v672_v62, %v2189_v56  ;;  %v969_v7 = vstv %s1704_s10  ;;  %s1725_s5 = sld [smem:[#allocation3 + $0x3d]] }
  0x6b   : > { %v808_v2 = vmul.f32 %v807_v0, %v2189_v56  ;;  %v816_v14 = vstv %s1683_s24  ;;  %v982_v16 = vstv %s1706_s25  ;;  %s1685_s9 = sld [smem:[#allocation3 + $0x11]] }
  0x6c   : > { %v1663_v4 = vrot.slane %v651_v63, 9  ;;  %v1666_v6 = vrot.slane %v673_v1, 9  ;;  %v817_v15 = vmul.f32 %v816_v14, %v2189_v56  ;;  %s1686_s10 = sld [smem:[#allocation3 + $0x42]] }
  0x6d   : > { %s1746_s24 = sld [smem:[#allocation3 + $0x3e]] }
  0x6e   : > { %s1688_s25 = sld [smem:[#allocation3 + $0x18]] }
  0x6f   : > { %v694_v21 = vstv %s1668_s29  ;;  %s1670_s29 = sld [smem:[#allocation3 + $0x1e]] }
  0x70   : > { %v1135_v22 = vstv %s1725_s5  ;;  %v695_v23 = vmul.f32 %v694_v21, %v2189_v56  ;;  %s1709_s5 = sld [smem:[#allocation3 + $0x19]] }
  0x71   : > { %522 = vrot.lane.b32.xlu2 %v520_v8, %s2026_s27  ;;  %478 = vrot.lane.b32.xlu1 %v476_v9, %s2028_s4  ;;  %v970_v8 = vmul.f32 %v969_v7, %v2189_v56  ;;  %v685_v9 = vstv %s1667_s17  ;;  %v829_v24 = vstv %s1685_s9  ;;  %v1136_v25 = vmul.f32 %v1135_v22, %v2189_v56  ;;  %s1745_s17 = sld [smem:[#allocation3 + $0xd]] }
  0x72   : > { %500 = vrot.lane.b32.xlu0 %v498_v10, %s2027_s28  ;;  %v960_v10 = vstv %s1703_s22  ;;  %v686_v12 = vmul.f32 %v685_v9, %v2189_v56  ;;  %s1707_s22 = sld [smem:[#allocation3 + $0x43]]  ;;  %v838_v30 = vstv %s1686_s10 }
  0x73   : > { %v1705_v11 = vrot.slane %v970_v8, 9  ;;  %v961_v13 = vmul.f32 %v960_v10, %v2189_v56  ;;  %v1726_v29 = vrot.slane %v1136_v25, 9  ;;  %v839_v33 = vmul.f32 %v838_v30, %v2189_v56  ;;  %s1710_s9 = sld [smem:[#allocation3 + $0x4a]] }
  0x74   : > { %v1301_v39 = vstv %s1746_s24  ;;  %s1728_s10 = sld [smem:[#allocation3 + $0x44]] }
  0x75   : > { %s1673_s24 = sld [smem:[#allocation3 + $0x25]] }
  0x76   : > { %v1004_v53 = vstv %s1709_s5  ;;  %s2314_s5 = sld [smem:[#allocation3 + $0x45]] }
  0x77   : > { %v1292_v32 = vstv %s1745_s17  ;;  %s1617_s17 = sld [smem:[#allocation3 + $0x31]] }
  0x78   : > { %v991_v38 = vstv %s1707_s22  ;;  %s1689_s22 = sld [smem:[#allocation3 + $0x49]] }
  0x79   : > { %371 = vrot.lane.b32.xlu2 %v1627_v17, %s2026_s27  ;;  %348 = vrot.lane.b32.xlu1 %v1624_v18, %s2027_s28  ;;  %v1126_v17 = vstv %s1724_s26  ;;  %v983_v18 = vmul.f32 %v982_v16, %v2189_v56  ;;  %v992_v40 = vmul.f32 %v991_v38, %v2189_v56  ;;  %s1748_s26 = sld [smem:[#allocation3 + $0x14]] }
  0x7a   : > { %325 = vrot.lane.b32.xlu0 %v1621_v19, %s2028_s4  ;;  %v1684_v19 = vrot.slane %v817_v15, 9  ;;  %v1127_v20 = vmul.f32 %v1126_v17, %v2189_v56  ;;  %v1157_v61 = vstv %s1728_s10  ;;  %s2326_s10 = sld [smem:[#allocation3 + $0x1f]] }
  0x7b   : > { %v1708_v47 = vrot.slane %v992_v40, 9  ;;  %v1158_v0 = vmul.f32 %v1157_v61, %v2189_v56  ;;  %v729_v15 = vstv %s1673_s24  ;;  %s2358_s24 = sld [smem:[#allocation3 + $0x56]] }
  0x7d   : > { %v301_v7 = vstv %s1617_s17  ;;  %v1729_v9 = vrot.slane %v1158_v0, 9  ;;  %s2344_s17 = sld [smem:[#allocation3 + $0x20]] }
  0x7f   : > { %v1314_v49 = vstv %s1748_s26  ;;  %s2312_s26 = sld [smem:[#allocation3 + $0x32]] }
  0x80   : > { %v1315_v55 = vmul.f32 %v1314_v49, %v2189_v56 }
  0x81   : > { %441 = vrot.lane.b32.xlu2 %v1636_v26, %s2030_s20  ;;  %395 = vrot.lane.b32.xlu1 %v1630_v27, %s2031_s21  ;;  %v1669_v27 = vrot.slane %v695_v23, 9 }
  0x82   : > { %418 = vrot.lane.b32.xlu0 %v1633_v28, %s2029_s18  ;;  %v830_v28 = vmul.f32 %v829_v24, %v2189_v56  ;;  %v730_v24 = vmul.f32 %v729_v15, %v2197_v60 }
  0x83   : > { %v1026_v0 = vstv %s2344_s17  ;;  %s2454_s17 = sld [smem:[#allocation3 + $0x2]] }
  0x85   : > { %v466_v21 = vstv %s2312_s26  ;;  %s2400_s26 = sld [smem:[#allocation3 + $0x21]] }
  0x89   : > { %489 = vrot.lane.b32.xlu2 %v1642_v35, %s2028_s4  ;;  %511 = vrot.lane.b32.xlu1 %v1645_v36, %s2027_s28  ;;  %v1293_v36 = vmul.f32 %v1292_v32, %v2189_v56 }
  0x8a   : > { %533 = vrot.lane.b32.xlu0 %v1648_v37, %s2026_s27  ;;  %v1687_v37 = vrot.slane %v839_v33, 9 }
  0x91   : > { %555 = vrot.lane.b32.xlu2 %v1651_v42, %s2031_s21  ;;  %544 = vrot.lane.b32.xlu1 %v542_v43, %s2031_s21  ;;  %v849_v42 = vld [vmem:[#allocation2 + $0x2] sm:$0xf]  ;;  %v852_v43 = vstv %s1688_s25  ;;  %s2308_s25 = sld [smem:[#allocation3 + $0x1a]] }
  0x92   : > { %566 = vrot.lane.b32.xlu0 %v564_v44, %s2029_s18  ;;  %v1302_v44 = vmul.f32 %v1301_v39, %v2189_v56  ;;  %v853_v46 = vmul.f32 %v852_v43, %v849_v42  ;;  %v874_v39 = vstv %s2326_s10  ;;  %s2434_s10 = sld [smem:[#allocation3 + $0x26]] }
  0x94   : > { %v1747_v48 = vrot.slane %v1302_v44, 9 }
  0x99   : > { %588 = vrot.lane.b32.xlu2 %v586_v50, %s2030_s20  ;;  %577 = vrot.lane.b32.xlu1 %v1654_v51, %s2029_s18  ;;  %v707_v50 = vstv %s1670_s29  ;;  %s1731_s29 = sld [smem:[#allocation3 + $0x4b]] }
  0x9a   : > { %599 = vrot.lane.b32.xlu0 %v1657_v52, %s2030_s20 }
  0xa1   : > { %666 = vrot.lane.b32.xlu2 %v664_v57, %s2027_s28  ;;  %612 = vrot.lane.b32.xlu1 %v611_v58, %s2032_s11  ;;  %s1727_s11 = sld [smem:[#allocation3 + $0x13]]  ;;  %v708_v57 = vmul.f32 %v707_v50, %v2197_v60  ;;  %v1005_v58 = vmul.f32 %v1004_v53, %v2197_v60 }
  0xa2   : > { %644 = vrot.lane.b32.xlu0 %v642_v59, %s2028_s4  ;;  %v1013_v59 = vstv %s1710_s9  ;;  %s2320_s9 = sld [smem:[#allocation3 + $0x1]] }
  0xa3   : > { %v1014_v63 = vmul.f32 %v1013_v59, %v2197_v60 }
  0xa5   : > { %v1711_v8 = vrot.slane %v1014_v63, 9 }
  0xa7   : > { %v1148_v31 = vstv %s1727_s11  ;;  %s1671_s11 = sld [smem:[#allocation3 + $0x4f]] }
  0xa8   : > { %v1149_v35 = vmul.f32 %v1148_v31, %v2189_v56  ;;  %v467_v31 = vmul.f32 %v466_v21, %v2189_v56 }
  0xa9   : > { %810 = vrot.lane.b32.xlu2 %v808_v2, %s2028_s4  ;;  %655 = vrot.lane.b32.xlu1 %v1663_v4, %s2028_s4 }
  0xaa   : > { %677 = vrot.lane.b32.xlu0 %v1666_v6, %s2027_s28  ;;  %v1639_v43 = vrot.slane %v467_v31, 9 }
  0xad   : > { %v716_v62 = vstv %s1671_s11  ;;  %s2333_s11 = sld [smem:[#allocation3 + $0x50]] }
  0xae   : > { %v717_v1 = vmul.f32 %v716_v62, %v2197_v60 }
  0xaf   : > { %v2281_v41 = vpop.permute.xlu0 %453 }
  0xb0   : > { %v1672_v10 = vrot.slane %v717_v1, 9 }
  0xb1   : > { %974 = vrot.lane.b32.xlu2 %v1705_v11, %s2028_s4  ;;  %688 = vrot.lane.b32.xlu1 %v686_v12, %s2026_s27  ;;  %v861_v11 = vstv %s1689_s22  ;;  %v302_v12 = vmul.f32 %v301_v7, %v2189_v56  ;;  %s2347_s22 = sld [smem:[#allocation3 + $0x1b]] }
  0xb2   : > { %963 = vrot.lane.b32.xlu0 %v961_v13, %s2028_s4  ;;  %v862_v14 = vmul.f32 %v861_v11, %v849_v42 }
  0xb3   : > { %v883_v50 = vstv %s2333_s11  ;;  %s2452_s11 = sld [smem:[#allocation3 + $0x57]] }
  0xb4   : > { %v1690_v25 = vrot.slane %v862_v14, 9  ;;  %v884_v61 = vmul.f32 %v883_v50, %v2197_v60 }
  0xb9   : > { %985 = vrot.lane.b32.xlu2 %v983_v18, %s2027_s28  ;;  %821 = vrot.lane.b32.xlu1 %v1684_v19, %s2028_s4  ;;  %v1170_v18 = vstv %s2308_s25  ;;  %s2362_s25 = sld [smem:[#allocation3 + $0x51]] }
  0xba   : > { %1129 = vrot.lane.b32.xlu0 %v1127_v20, %s2028_s4  ;;  %v1618_v20 = vrot.slane %v302_v12, 9 }
  0xbb   : > { %v2266_v26 = vpop.permute.xlu2 %359 }
  0xbf   : > { %v1035_v31 = vstv %s2362_s25  ;;  %s2484_s25 = sld [smem:[#allocation3 + $0x35]] }
  0xc1   : > { %699 = vrot.lane.b32.xlu2 %v1669_v27, %s2026_s27  ;;  %832 = vrot.lane.b32.xlu1 %v830_v28, %s2027_s28  ;;  %v1179_v27 = vstv %s1731_s29  ;;  %v1171_v28 = vmul.f32 %v1170_v18, %v2197_v60  ;;  %v1027_v18 = vmul.f32 %v1026_v0, %v2197_v60  ;;  %s2406_s29 = sld [smem:[#allocation3 + $0x2c]] }
  0xc2   : > { %1140 = vrot.lane.b32.xlu0 %v1726_v29, %s2028_s4  ;;  %v1323_v29 = vstv %s2314_s5  ;;  %v1180_v32 = vmul.f32 %v1179_v27, %v2197_v60  ;;  %v738_v27 = vstv %s2358_s24  ;;  %s2417_s5 = sld [smem:[#allocation3 + $0x5d]] }
  0xc3   : > { %v2273_v34 = vpop.permute.xlu2 %406  ;;  %s2479_s24 = sld [smem:[#allocation3 + $0x53]] }
  0xc9   : > { %1151 = vrot.lane.b32.xlu2 %v1149_v35, %s2027_s28  ;;  %1295 = vrot.lane.b32.xlu1 %v1293_v36, %s2028_s4  ;;  %v463_v35 = vstv %s2320_s9  ;;  %v1324_v36 = vmul.f32 %v1323_v29, %v2189_v56  ;;  %s2420_s9 = sld [smem:[#allocation3 + $0x52]] }
  0xca   : > { %843 = vrot.lane.b32.xlu0 %v1687_v37, %s2027_s28  ;;  %v464_v42 = vmul.f32 %v463_v35, %v2189_v56 }
  0xcb   : > { %v2284_v45 = vpop.permute.xlu2 %522  ;;  %v1750_v49 = vrot.slane %v1324_v36, 9 }
  0xcc   : > { %v472_v63 = vadd.f32 %v1639_v43, %v464_v42 }
  0xd1   : > { %855 = vrot.lane.b32.xlu2 %v853_v46, %s2026_s27  ;;  %996 = vrot.lane.b32.xlu1 %v1708_v47, %s2027_s28  ;;  %v1732_v46 = vrot.slane %v1180_v32, 9 }
  0xd2   : > { %1306 = vrot.lane.b32.xlu0 %v1747_v48, %s2028_s4  ;;  %s2296_s4 = sld [smem:[#allocation3]] }
  0xd3   : > { %v2289_v51 = vpop.permute.xlu2 %371  ;;  %v2291_v52 = vpop.permute.xlu1 %336 }
  0xd4   : > { %v314_v54 = vpop.permute.xlu0 %313  ;;  %v338_v47 = vrot.slane %v2291_v52, 2 }
  0xd5   : > { %v315_v23 = vrot.slane %v314_v54, 2 }
  0xd6   : > { %v340_v62 = vsel %vm339_vm12, %v2291_v52, %v338_v47  ;;  %v373_v52 = vrot.slane %v2289_v51, 2 }
  0xd7   : > { %v317_v33 = vsel %vm316_vm11, %v314_v54, %v315_v23  ;;  %v875_v54 = vmul.f32 %v874_v39, %v2197_v60 }
  0xd8   : > { %v298_v13 = vstv %s2296_s4  ;;  %s2355_s4 = sld [smem:[#allocation3 + $0x4c]]  ;;  %v374_v29 = vsel %vm362_vm13, %v2289_v51, %v373_v52 }
  0xd9   : > { %1317 = vrot.lane.b32.xlu2 %v1315_v55, %s2027_s28  ;;  %710 = vrot.lane.b32.xlu1 %v708_v57, %s2031_s21  ;;  %v299_v19 = vmul.f32 %v298_v13, %v2189_v56  ;;  %v361_v55 = vrot.slane %v2266_v26, 2 }
  0xda   : > { %1007 = vrot.lane.b32.xlu0 %v1005_v58, %s2026_s27 }
  0xdb   : > { %v2304_v2 = vpop.permute.xlu2 %441  ;;  %v2306_v4 = vpop.permute.xlu1 %429  ;;  %v307_v30 = vadd.f32 %v1618_v20, %v299_v19 }
  0xdc   : > { %v2310_v6 = vpop.permute.xlu0 %383 }
  0xdd   : > { %v319_v40 = vadd.f32 %v317_v33, %v307_v30  ;;  %v385_v19 = vrot.slane %v2310_v6, 6 }
  0xde   : > { %v1345_v21 = vstv %s2355_s4  ;;  %s2475_s4 = sld [smem:[#allocation3 + $0x58]] }
  0xdf   : > { %v1346_v33 = vmul.f32 %v1345_v21, %v2197_v60 }
  0xe1   : > { %1018 = vrot.lane.b32.xlu2 %v1711_v8, %s2026_s27  ;;  %1162 = vrot.lane.b32.xlu1 %v1729_v9, %s2027_s28  ;;  %v1336_v9 = vstv %s2347_s22  ;;  %s2466_s22 = sld [smem:[#allocation3 + $0x22]] }
  0xe2   : > { %721 = vrot.lane.b32.xlu0 %v1672_v10, %s2031_s21  ;;  %v363_v10 = vsel %vm362_vm13, %v2266_v26, %v361_v55  ;;  %v1337_v26 = vmul.f32 %v1336_v9, %v2197_v60  ;;  %v1192_v9 = vstv %s2400_s26  ;;  %s2495_s26 = sld [smem:[#allocation3 + $0x34]] }
  0xe3   : > { %v2323_v16 = vpop.permute.xlu2 %489  ;;  %v479_v17 = vpop.permute.xlu1 %478  ;;  %v1193_v21 = vmul.f32 %v1192_v9, %v2197_v60 }
  0xe4   : > { %v2330_v22 = vpop.permute.xlu0 %500  ;;  %v480_v53 = vrot.slane %v479_v17, 2  ;;  %v491_v1 = vrot.slane %v2323_v16, 2 }
  0xe6   : > { %v481_v7 = vsel %vm316_vm11, %v479_v17, %v480_v53  ;;  %v1693_v17 = vrot.slane %v884_v61, 9  ;;  %v492_v23 = vsel %vm316_vm11, %v2323_v16, %v491_v1  ;;  %v387_v16 = vsel %vm386_vm14, %v385_v19, %v2310_v6 }
  0xe7   : > { %v483_v20 = vadd.f32 %v481_v7, %v472_v63  ;;  %v443_v61 = vrot.slane %v2304_v2, 6 }
  0xe9   : > { %732 = vrot.lane.b32.xlu2 %v730_v24, %s2029_s18  ;;  %866 = vrot.lane.b32.xlu1 %v1690_v25, %s2026_s27  ;;  %v502_v24 = vrot.slane %v2330_v22, 2  ;;  %v494_v35 = vadd.f32 %v492_v23, %v483_v20 }
  0xea   : > { %1173 = vrot.lane.b32.xlu0 %v1171_v28, %s2026_s27  ;;  %v408_v28 = vrot.slane %v2273_v34, 6 }
  0xeb   : > { %v2349_v37 = vpop.permute.xlu2 %555  ;;  %v349_v38 = vpop.permute.xlu1 %348  ;;  %v503_v51 = vsel %vm339_vm12, %v2330_v22, %v502_v24  ;;  %v431_v22 = vrot.slane %v2306_v4, 6 }
  0xec   : > { %v326_v44 = vpop.permute.xlu0 %325  ;;  %v350_v57 = vrot.slane %v349_v38, 2  ;;  %v410_v6 = vsel %vm409_vm15, %v408_v28, %v2273_v34  ;;  %v505_v50 = vadd.f32 %v503_v51, %v494_v35 }
  0xed   : > { %v327_v48 = vrot.slane %v326_v44, 2  ;;  %v433_v1 = vsel %vm432_vm0, %v431_v22, %v2306_v4  ;;  %v444_v4 = vsel %vm432_vm0, %v443_v61, %v2304_v2 }
  0xee   : > { %v351_v11 = vsel %vm339_vm12, %v349_v38, %v350_v57  ;;  %v739_v38 = vmul.f32 %v738_v27, %v2197_v60  ;;  %v760_v27 = vstv %s2417_s5  ;;  %s2501_s5 = sld [smem:[#allocation3 + $0x3]] }
  0xef   : > { %v328_v58 = vsel %vm316_vm11, %v326_v44, %v327_v48 }
  0xf0   : > { %v330_v59 = vadd.f32 %v328_v58, %v319_v40  ;;  %v1036_v40 = vmul.f32 %v1035_v31, %v2197_v60  ;;  %v1675_v55 = vrot.slane %v739_v38, 9 }
  0xf1   : > { %1184 = vrot.lane.b32.xlu2 %v1732_v46, %s2026_s27  ;;  %1328 = vrot.lane.b32.xlu1 %v1750_v49, %s2027_s28  ;;  %s2393_s28 = sld [smem:[#allocation3 + $0x27]]  ;;  %v524_v46 = vrot.slane %v2284_v45, 2 }
  0xf2   : > { %v342_v8 = vadd.f32 %v340_v62, %v330_v59  ;;  %877 = vrot.lane.b32.xlu0 %v875_v54, %s2031_s21  ;;  %v1753_v54 = vrot.slane %v1346_v33, 9  ;;  %v1714_v59 = vrot.slane %v1036_v40, 9 }
  0xf3   : > { %v2378_v12 = vpop.permute.xlu2 %588  ;;  %v396_v13 = vpop.permute.xlu1 %395  ;;  %v525_v63 = vsel %vm362_vm13, %v2284_v45, %v524_v46  ;;  %v455_v45 = vrot.slane %v2281_v41, 6 }
  0xf4   : > { %v353_v14 = vadd.f32 %v351_v11, %v342_v8  ;;  %v419_v15 = vpop.permute.xlu0 %418  ;;  %v397_v30 = vrot.slane %v396_v13, 6  ;;  %v590_v33 = vrot.slane %v2378_v12, 6 }
  0xf5   : > { %v420_v36 = vrot.slane %v419_v15, 6  ;;  %v457_v28 = vsel %vm456_vm1, %v455_v45, %v2281_v41  ;;  %v1367_v45 = vstv %s2479_s24  ;;  %s2540_s24 = sld [smem:[#allocation3 + $0x29]] }
  0xf6   : > { %v365_v25 = vadd.f32 %v363_v10, %v353_v14  ;;  %v398_v42 = vsel %vm386_vm14, %v397_v30, %v396_v13  ;;  %v557_v10 = vrot.slane %v2349_v37, 6  ;;  %v751_v13 = vstv %s2406_s29  ;;  %s2498_s29 = sld [smem:[#allocation3 + $0x4]] }
  0xf7   : > { %v421_v53 = vsel %vm409_vm15, %v420_v36, %v419_v15  ;;  %v1048_v8 = vstv %s2393_s28  ;;  %v752_v23 = vmul.f32 %v751_v13, %v2197_v60  ;;  %v1201_v30 = vstv %s2420_s9  ;;  %s2490_s28 = sld [smem:[#allocation3 + $0x28]]  ;;  %s2033_s9 = smov 127  }
  0xf8   : > { %v376_v32 = vadd.f32 %v374_v29, %v365_v25  ;;  %v558_v2 = vsel %vm386_vm14, %v557_v10, %v2349_v37  ;;  %v761_v37 = vmul.f32 %v760_v27, %v2197_v60  ;;  %v1202_v35 = vmul.f32 %v1201_v30, %v2197_v60 }
  0xf9   : > { %888 = vrot.lane.b32.xlu2 %v1693_v17, %s2031_s21  ;;  %1029 = vrot.lane.b32.xlu1 %v1027_v18, %s2031_s21  ;;  %v591_v46 = vsel %vm432_vm0, %v590_v33, %v2378_v12 }
  0xfa   : > { %v389_v39 = vadd.f32 %v387_v16, %v376_v32  ;;  %1339 = vrot.lane.b32.xlu0 %v1337_v26, %s2026_s27  ;;  %v1049_v26 = vmul.f32 %v1048_v8, %v2197_v60  ;;  %v896_v16 = vstv %s2434_s10  ;;  %s2511_s10 = sld [smem:[#allocation3 + $0x2d]] }
  0xfb   : > { %v2411_v43 = vpop.permute.xlu2 %666  ;;  %v512_v44 = vpop.permute.xlu1 %511 }
  0xfc   : > { %v400_v47 = vadd.f32 %v398_v42, %v389_v39  ;;  %v513_v48 = vrot.slane %v512_v44, 2  ;;  %v534_v49 = vpop.permute.xlu0 %533  ;;  %v1678_v42 = vrot.slane %v761_v37, 9  ;;  %v948_v30 = vstv %s2498_s29  ;;  %s2590_s29 = sld [smem:[#allocation3 + $0x60]] }
  0xfd   : > { %v535_v58 = vrot.slane %v534_v49, 2 }
  0xfe   : > { %v412_v34 = vadd.f32 %v410_v6, %v400_v47  ;;  %v514_v57 = vsel %vm339_vm12, %v512_v44, %v513_v48  ;;  %v897_v44 = vmul.f32 %v896_v16, %v2197_v60  ;;  %v1735_v48 = vrot.slane %v1202_v35, 9 }
  0xff   : > { %v516_v62 = vadd.f32 %v514_v57, %v505_v50  ;;  %v536_v11 = vsel %vm362_vm13, %v534_v49, %v535_v58 }
 0x100   : > { %v423_v0 = vadd.f32 %v421_v53, %v412_v34  ;;  %v905_v53 = vstv %s2452_s11  ;;  %v1358_v34 = vstv %s2466_s22  ;;  %s2520_s11 = sld [smem:[#allocation3 + $0x36]] }
 0x101   : > { %v527_v7 = vadd.f32 %v525_v63, %v516_v62  ;;  %1350 = vrot.lane.b32.xlu2 %v1753_v54, %s2026_s27  ;;  %743 = vrot.lane.b32.xlu1 %v1675_v55, %s2029_s18  ;;  %s2441_s27 = sld [smem:[#allocation3 + $0x33]]  ;;  %v629_v54 = vstv %s2454_s17  ;;  %v906_v57 = vmul.f32 %v905_v53, %v2197_v60  ;;  %v1359_v8 = vmul.f32 %v1358_v34, %v2197_v60 }
 0x102   : > { %v435_v52 = vadd.f32 %v433_v1, %v423_v0  ;;  %1040 = vrot.lane.b32.xlu0 %v1714_v59, %s2031_s21  ;;  %v630_v61 = vmul.f32 %v629_v54, %v2189_v56  ;;  %s2523_s17 = sld [smem:[#allocation3 + $0x59]] }
 0x103   : > { %v2439_v14 = vpop.permute.xlu2 %810  ;;  %v545_v15 = vpop.permute.xlu1 %544  ;;  %v538_v20 = vadd.f32 %v536_v11, %v527_v7  ;;  %v1696_v10 = vrot.slane %v906_v57, 9  ;;  %s2527_s22 = sld [smem:[#allocation3 + $0x5e]] }
 0x104   : > { %v546_v17 = vrot.slane %v545_v15, 6  ;;  %v567_v18 = vpop.permute.xlu0 %566  ;;  %v446_v19 = vadd.f32 %v444_v4, %v435_v52  ;;  %v1057_v52 = vstv %s2475_s4  ;;  %s2535_s4 = sld [smem:[#allocation3 + $0x5]]  ;;  %v812_v53 = vrot.slane %v2439_v14, 2 }
 0x105   : > { %v568_v25 = vrot.slane %v567_v18, 6 }
 0x106   : > { %v547_v24 = vsel %vm386_vm14, %v546_v17, %v545_v15  ;;  %v2456_v31 = vmul.f32 %v457_v28, %v446_v19  ;;  %v1058_v15 = vmul.f32 %v1057_v52, %v2197_v60  ;;  %v951_v17 = vstv %s2484_s25  ;;  %s2563_s25 = sld [smem:[#allocation3 + $0x5a]] }
 0x107   : > { %v549_v29 = vadd.f32 %v547_v24, %v538_v20  ;;  %v569_v41 = vsel %vm409_vm15, %v568_v25, %v567_v18  ;;  %v632_v40 = vstv %s2441_s27  ;;  %v1368_v18 = vmul.f32 %v1367_v45, %v2197_v60  ;;  %s2513_s27 = sld [smem:[#allocation3 + $0x2e]]  ;;  %v2565_v45 = vld [vmem:[#allocation2] sm:$0x3f] }
 0x108   : > { %v633_v50 = vmul.f32 %v632_v40, %v2189_v56  ;;  %v1214_v19 = vstv %s2490_s28  ;;  %v952_v27 = vmul.f32 %v951_v17, %v2189_v56  ;;  %s2034_s28 = smov 79  }
 0x109   : > { %v560_v32 = vadd.f32 %v558_v2, %v549_v29  ;;  %1051 = vrot.lane.b32.xlu2 %v1049_v26, %s2029_s18  ;;  %1195 = vrot.lane.b32.xlu1 %v1193_v21, %s2031_s21  ;;  %v798_v2 = vstv %s2495_s26  ;;  %v1717_v29 = vrot.slane %v1058_v15, 9  ;;  %v1756_v33 = vrot.slane %v1368_v18, 9  ;;  %s2580_s26 = sld [smem:[#allocation3 + $0x2f]] }
 0x10a   : > { %754 = vrot.lane.b32.xlu0 %v752_v23, %s2030_s20  ;;  %v1660_v62 = vrot.slane %v633_v50, 9  ;;  %v668_v23 = vrot.slane %v2411_v43, 2  ;;  %v799_v16 = vmul.f32 %v798_v2, %v2189_v56  ;;  %v927_v52 = vstv %s2527_s22  ;;  %s2039_s22 = smov 125  }
 0x10b   : > { %v2468_v36 = vpop.permute.xlu2 %974  ;;  %v578_v38 = vpop.permute.xlu1 %577  ;;  %v571_v6 = vadd.f32 %v569_v41, %v560_v32  ;;  %v1215_v32 = vmul.f32 %v1214_v19, %v2197_v60  ;;  %v795_v41 = vstv %s2501_s5  ;;  %v949_v60 = vmul.f32 %v948_v30, %v2189_v56  ;;  %s2593_s5 = sld [smem:[#allocation3 + $0x37]] }
 0x10c   : > { %v579_v51 = vrot.slane %v578_v38, 6  ;;  %v600_v39 = vpop.permute.xlu0 %599  ;;  %v638_v13 = vadd.f32 %v1660_v62, %v630_v61  ;;  %v2550_v61 = vld [vmem:[#allocation2 + $0x2] sm:$0x3f]  ;;  %v1114_v17 = vstv %s2535_s4  ;;  %v813_v19 = vsel %vm316_vm11, %v2439_v14, %v812_v53  ;;  %s2040_s4 = smov 124  }
 0x10d   : > { %v601_v47 = vrot.slane %v600_v39, 6  ;;  %v1070_v50 = vstv %s2513_s27  ;;  %s2612_s27 = sld [smem:[#allocation3 + $0x61]] }
 0x10e   : > { %v580_v22 = vsel %vm409_vm15, %v579_v51, %v578_v38  ;;  %v669_v38 = vsel %vm339_vm12, %v2411_v43, %v668_v23  ;;  %v918_v43 = vstv %s2511_s10  ;;  %s2607_s10 = sld [smem:[#allocation3 + $0x30]] }
 0x10f   : > { %v582_v49 = vadd.f32 %v580_v22, %v571_v6  ;;  %v602_v12 = vsel %vm432_vm0, %v601_v47, %v600_v39  ;;  %v1702_v39 = vrot.slane %v952_v27, 9  ;;  %v772_v6 = vld [vmem:[#allocation7 + $0x2] ss:$8 sm:$0x3]  ;;  %v976_v22 = vrot.slane %v2468_v36, 2 }
 0x110   : > { %v919_v62 = vmul.f32 %v2550_v61, %v918_v43 }
 0x111   : > { %v593_v55 = vadd.f32 %v591_v46, %v582_v49  ;;  %765 = vrot.lane.b32.xlu2 %v1678_v42, %s2030_s20  ;;  %899 = vrot.lane.b32.xlu1 %v897_v44, %s2029_s18  ;;  %v796_v42 = vmul.f32 %v795_v41, %v2189_v56  ;;  %v1681_v46 = vrot.slane %v799_v16, 9  ;;  %v957_v56 = vadd.f32 %v1702_v39, %v949_v60 }
 0x112   : > { %1206 = vrot.lane.b32.xlu0 %v1735_v48, %s2031_s21 }
 0x113   : > { %v2492_v58 = vpop.permute.xlu2 %985  ;;  %v613_v59 = vpop.permute.xlu1 %612  ;;  %v604_v1 = vadd.f32 %v602_v12, %v593_v55  ;;  %v777_v12 = vperm.slane %v772_v6, %v2181_v5 }
 0x114   : > { %v614_v63 = vrot.slane %v613_v59, 6  ;;  %v645_v0 = vpop.permute.xlu0 %644  ;;  %v987_v34 = vrot.slane %v2492_v58, 2 }
 0x115   : > { %v646_v7 = vrot.slane %v645_v0, 2 }
 0x116   : > { %v616_v9 = vsel %vm615_vm2, %v614_v63, %v613_v59  ;;  %v1117_v59 = vstv %s2520_s11  ;;  %v988_v15 = vsel %vm339_vm12, %v2492_v58, %v987_v34  ;;  %s2036_s11 = smov 82   ;;  %vm1488_vm2 = vcmask 416768  }
 0x117   : > { %v618_v11 = vmul.f32 %v616_v9, %v604_v1  ;;  %v647_v4 = vsel %vm316_vm11, %v645_v0, %v646_v7  ;;  %v1071_v1 = vmul.f32 %v2550_v61, %v1070_v50  ;;  %v1223_v7 = vstv %s2523_s17  ;;  %s2037_s17 = smov 83  }
 0x118   : > { %v649_v20 = vadd.f32 %v647_v4, %v638_v13  ;;  %v1118_v4 = vmul.f32 %v2565_v45, %v1117_v59 }
 0x119   : > { %1361 = vrot.lane.b32.xlu1 %v1359_v8, %s2031_s21  ;;  %620 = vrot.lane.b32.xlu2 %v618_v11, %s2033_s9  ;;  %v977_v8 = vsel %vm316_vm11, %v2468_v36, %v976_v22  ;;  %v804_v11 = vadd.f32 %v1681_v46, %v796_v42  ;;  %v1224_v36 = vmul.f32 %v2550_v61, %v1223_v7  ;;  %s2601_s9 = sld [smem:[#allocation3 + $0x6]] }
 0x11a   : > { %910 = vrot.lane.b32.xlu0 %v1696_v10, %s2029_s18 }
 0x11b   : > { %v700_v26 = vpop.permute.xlu2 %699  ;;  %v656_v21 = vpop.permute.xlu1 %655  ;;  %v815_v14 = vadd.f32 %v813_v19, %v804_v11  ;;  %v1738_v30 = vrot.slane %v1224_v36, 9  ;;  %v1411_v19 = vstv %s2612_s27 }
 0x11c   : > { %v657_v24 = vrot.slane %v656_v21, 2  ;;  %v678_v25 = vpop.permute.xlu0 %677  ;;  %v701_v44 = vrot.slane %v700_v26, 2 }
 0x11d   : > { %v679_v28 = vrot.slane %v678_v25, 2 }
 0x11e   : > { %v658_v37 = vsel %vm316_vm11, %v656_v21, %v657_v24  ;;  %v702_v63 = vsel %vm362_vm13, %v700_v26, %v701_v44  ;;  %v928_v26 = vmul.f32 %v2550_v61, %v927_v52  ;;  %v1380_v21 = vstv %s2540_s24  ;;  %s2041_s24 = smov 123  }
 0x11f   : > { %v660_v35 = vadd.f32 %v658_v37, %v649_v20  ;;  %v680_v51 = vsel %vm339_vm12, %v678_v25, %v679_v28  ;;  %v1115_v24 = vmul.f32 %v2565_v45, %v1114_v17  ;;  %v1723_v25 = vrot.slane %v1118_v4, 9 }
 0x121   : > { %v671_v40 = vadd.f32 %v669_v38, %v660_v35  ;;  %1062 = vrot.lane.b32.xlu1 %v1717_v29, %s2029_s18  ;;  %1217 = vrot.lane.b32.xlu2 %v1215_v32, %s2029_s18  ;;  %v1381_v32 = vmul.f32 %v2550_v61, %v1380_v21  ;;  %v1389_v35 = vstv %s2563_s25  ;;  %v1123_v38 = vadd.f32 %v1723_v25, %v1115_v24  ;;  %s1763_s25 = sld [smem:[#allocation3 + $0x62]] }
 0x122   : > { %1372 = vrot.lane.b32.xlu0 %v1756_v33, %s2031_s21  ;;  %s2557_s21 = sld [smem:[#allocation3 + $0x5f]]  ;;  %v1699_v33 = vrot.slane %v928_v26, 9  ;;  %v1390_v39 = vmul.f32 %v2550_v61, %v1389_v35 }
 0x123   : > { %v682_v47 = vadd.f32 %v680_v51, %v671_v40  ;;  %v2543_v48 = vpop.permute.xlu2 %1151  ;;  %v689_v49 = vpop.permute.xlu1 %688  ;;  %v1236_v40 = vstv %s2580_s26  ;;  %s1771_s26 = sshll.u32 %s2085_s16, 3  ;;  %s1494_s16 = scalar_lea.sflag [#allocation5], %s2168_s8 }
 0x124   : > { %v690_v54 = vrot.slane %v689_v49, 2  ;;  %v964_v55 = vpop.permute.xlu0 %963  ;;  %v1153_v6 = vrot.slane %v2543_v48, 2  ;;  %v1237_v50 = vmul.f32 %v2550_v61, %v1236_v40 }
 0x125   : > { %v965_v57 = vrot.slane %v964_v55, 2 }
 0x126   : > { %v691_v0 = vsel %vm362_vm13, %v689_v49, %v690_v54  ;;  %v1759_v54 = vrot.slane %v1390_v39, 9 }
 0x127   : > { %v693_v9 = vadd.f32 %v691_v0, %v682_v47  ;;  %v966_v10 = vsel %vm316_vm11, %v964_v55, %v965_v57  ;;  %v1154_v55 = vsel %vm339_vm12, %v2543_v48, %v1153_v6  ;;  %v1283_v57 = vstv %s2593_s5  ;;  %v1091_v0 = vld [vmem:[#allocation7 + $0x4] ss:$8 sm:$0x3] }
 0x128   : > { %v968_v13 = vadd.f32 %v966_v10, %v957_v56  ;;  %v1079_v41 = vstv %s2557_s21  ;;  %v1245_v56 = vstv %s2590_s29  ;;  %v1402_v10 = vstv %s2607_s10  ;;  %s2042_s21 = smov 122   ;;  %s217_s10 = scalar_lea.vmem [#allocation10], %s1615_s23 }
 0x129   : > { %778 = vrot.lane.b32.xlu1 %v777_v12, %s2034_s28  ;;  %921 = vrot.lane.b32.xlu2 %v919_v62, %s2030_s20  ;;  %v2573_v18 = vadd.f32 %v702_v63, %v693_v9  ;;  %v1080_v60 = vmul.f32 %v2550_v61, %v1079_v41  ;;  %v1246_v62 = vmul.f32 %v2550_v61, %v1245_v56  ;;  %s2043_s28 = smov 51   ;;  %s1507_s27 = sshll.u32 %s217_s10, 4  ;;  %s1508_s27 = int_to_ptr.vmem [resolvable:$true] %s1507_s27 }
 0x12a   : > { %v979_v20 = vadd.f32 %v977_v8, %v968_v13  ;;  %1073 = vrot.lane.b32.xlu0 %v1071_v1, %s2030_s20  ;;  %v1284_v63 = vmul.f32 %v2565_v45, %v1283_v57  ;;  %v1280_v8 = vstv %s2601_s9  ;;  %v1096_v13 = vperm.slane %v1091_v0, %v2181_v5  ;;  %s1505_s9 = scalar_lea.hbm %s2802_s3, %s1771_s26 }
 0x12b   : > { %v2582_v58 = vpop.permute.xlu2 %855  ;;  %v822_v23 = vpop.permute.xlu1 %821  ;;  %v1720_v49 = vrot.slane %v1080_v60, 9  ;;  %v1741_v4 = vrot.slane %v1246_v62, 9  ;;  %v1403_v36 = vmul.f32 %v2550_v61, %v1402_v10 }
 0x12c   : > { %v823_v2 = vrot.slane %v822_v23, 2  ;;  %v1130_v27 = vpop.permute.xlu0 %1129  ;;  %v2585_v28 = vadd.f32 %v988_v15, %v979_v20  ;;  %v857_v48 = vrot.slane %v2582_v58, 6  ;;  %v1281_v15 = vmul.f32 %v2565_v45, %v1280_v8  ;;  %v1257_v45 = vld [vmem:[#allocation7 + $0x5] ss:$8 sm:$0x3] }
 0x12d   : > { %v1131_v29 = vrot.slane %v1130_v27, 2  ;;  %v1744_v17 = vrot.slane %v1284_v63, 9  ;;  %v1262_v41 = vperm.slane %v1257_v45, %v2181_v5 }
 0x12e   : > { %v824_v37 = vsel %vm316_vm11, %v822_v23, %v823_v2  ;;  %v858_v20 = vsel %vm362_vm13, %v857_v48, %v2582_v58  ;;  %v1412_v2 = vmul.f32 %v2550_v61, %v1411_v19 }
 0x12f   : > { %v826_v16 = vadd.f32 %v824_v37, %v815_v14  ;;  %v1132_v51 = vsel %vm316_vm11, %v1130_v27, %v1131_v29  ;;  %v1289_v24 = vadd.f32 %v1744_v17, %v1281_v15 }
 0x130   : > { %v1134_v43 = vadd.f32 %v1132_v51, %v1123_v38  ;;  %v1762_v61 = vrot.slane %v1412_v2, 9 }
 0x131   : > { %1228 = vrot.lane.b32.xlu1 %v1738_v30, %s2029_s18  ;;  %1383 = vrot.lane.b32.xlu2 %v1381_v32, %s2029_s18  ;;  %v1423_v30 = vld [vmem:[#allocation7 + $0x6] ss:$8 sm:$0x3] }
 0x132   : > { %932 = vrot.lane.b32.xlu0 %v1699_v33, %s2030_s20  ;;  %v1428_v38 = vperm.slane %v1423_v30, %v2181_v5 }
 0x133   : > { %v2605_v42 = vpop.permute.xlu2 %1317  ;;  %v833_v44 = vpop.permute.xlu1 %832 }
 0x134   : > { %v834_v46 = vrot.slane %v833_v44, 2  ;;  %v1141_v22 = vpop.permute.xlu0 %1140  ;;  %v1319_v27 = vrot.slane %v2605_v42, 2 }
 0x135   : > { %v1142_v47 = vrot.slane %v1141_v22, 2 }
 0x136   : > { %v835_v53 = vsel %vm339_vm12, %v833_v44, %v834_v46  ;;  %v1320_v51 = vsel %vm339_vm12, %v2605_v42, %v1319_v27 }
 0x137   : > { %v837_v12 = vadd.f32 %v835_v53, %v826_v16  ;;  %v1143_v34 = vsel %vm316_vm11, %v1141_v22, %v1142_v47 }
 0x138   : > { %v1145_v59 = vadd.f32 %v1143_v34, %v1134_v43 }
 0x139   : > { %1084 = vrot.lane.b32.xlu1 %v1720_v49, %s2030_s20  ;;  %1239 = vrot.lane.b32.xlu2 %v1237_v50, %s2030_s20 }
 0x13a   : > { %1394 = vrot.lane.b32.xlu0 %v1759_v54, %s2029_s18  ;;  %v2623_v1 = vadd.f32 %v1154_v55, %v1145_v59  ;;  %s2035_s18 = smov 81  }
 0x13b   : > { %v1019_v7 = vpop.permute.xlu2 %1018  ;;  %v1296_v9 = vpop.permute.xlu1 %1295 }
 0x13c   : > { %v844_v52 = vpop.permute.xlu0 %843  ;;  %v1297_v26 = vrot.slane %v1296_v9, 2  ;;  %v1020_v44 = vrot.slane %v1019_v7, 6 }
 0x13d   : > { %v845_v11 = vrot.slane %v844_v52, 2 }
 0x13e   : > { %v1298_v58 = vsel %vm316_vm11, %v1296_v9, %v1297_v26 }
 0x13f   : > { %v846_v21 = vsel %vm339_vm12, %v844_v52, %v845_v11  ;;  %v1300_v16 = vadd.f32 %v1298_v58, %v1289_v24 }
 0x140   : > { %v848_v23 = vadd.f32 %v846_v21, %v837_v12 }
 0x141   : > { %1097 = vrot.lane.b32.xlu1 %v1096_v13, %s2035_s18  ;;  %1250 = vrot.lane.b32.xlu2 %v1741_v4, %s2030_s20  ;;  %s1509_s18 = sshll.u32 %s1505_s9, 4  ;;  %s1510_s18 = int_to_ptr.hbm [resolvable:$true] %s1509_s18 }
 0x142   : > { %1405 = vrot.lane.b32.xlu0 %v1403_v36, %s2030_s20  ;;  %v2638_v25 = vadd.f32 %v858_v20, %v848_v23 }
 0x143   : > { %v2642_v14 = vpop.permute.xlu2 %732  ;;  %v997_v29 = vpop.permute.xlu1 %996 }
 0x144   : > { %v998_v32 = vrot.slane %v997_v29, 2  ;;  %v1307_v37 = vpop.permute.xlu0 %1306 }
 0x145   : > { %v1308_v33 = vrot.slane %v1307_v37, 2 }
 0x146   : > { %v999_v35 = vsel %vm339_vm12, %v997_v29, %v998_v32 }
 0x147   : > { %v1001_v60 = vadd.f32 %v999_v35, %v2585_v28  ;;  %v1309_v39 = vsel %vm316_vm11, %v1307_v37, %v1308_v33  ;;  %v1021_v28 = vsel %vm362_vm13, %v1020_v44, %v1019_v7  ;;  %v734_v35 = vrot.slane %v2642_v14, 6 }
 0x148   : > { %v1311_v40 = vadd.f32 %v1309_v39, %v1300_v16  ;;  %vm1108_vm11 = vcmask 1014784  }
 0x149   : > { %1263 = vrot.lane.b32.xlu1 %v1262_v41, %s2036_s11  ;;  %1416 = vrot.lane.b32.xlu2 %v1762_v61, %s2030_s20  ;;  %s2038_s20 = smov 126   ;;  %s1958_s11 = sshra.s32 %s1510_s18, 4  ;;  %s1959_s11 = int_to_ptr.hbm [resolvable:$true] %s1958_s11 }
 0x14a   : > { %1429 = vrot.lane.b32.xlu0 %v1428_v38, %s2037_s17  ;;  %v1322_v6 = vadd.f32 %v1320_v51, %v1311_v40  ;;  %v735_v40 = vsel %vm409_vm15, %v734_v35, %v2642_v14  ;;  %s1960_s17 = scalar_lea.hbm %s1959_s11, 8  ;;  %p1965_p9 = scmp.lt.s32.totalorder %s1959_s11, %s2802_s3 }
 0x14b   : > { %v1185_v43 = vpop.permute.xlu2 %1184  ;;  %v711_v46 = vpop.permute.xlu1 %710  ;;  %p1961_p1 = scmp.ne.s32.totalorder %s1959_s11, %s1960_s17 }
 0x14c   : > { %v712_v22 = vrot.slane %v711_v46, 6  ;;  %v1008_v5 = vpop.permute.xlu0 %1007  ;;  %v1186_v62 = vrot.slane %v1185_v43, 6 }
 0x14d   : > { %v1009_v47 = vrot.slane %v1008_v5, 6  ;;  %p1962_p4 = pnand %p1961_p1, %p2130_p3 }
 0x14e   : > { %v713_v42 = vsel %vm386_vm14, %v712_v22, %v711_v46  ;;  %v1187_v7 = vsel %vm362_vm13, %v1186_v62, %v1185_v43 }
 0x14f   : > { %v715_v49 = vadd.f32 %v713_v42, %v2573_v18  ;;  %v1010_v50 = vsel %vm362_vm13, %v1009_v47, %v1008_v5  ;;  %p1963_p8 = pneg %p1962_p4 }
 0x150   : > { %v1012_v53 = vadd.f32 %v1010_v50, %v1001_v60 }
 0x152   : > { %v2656_v54 = vadd.f32 %v1021_v28, %v1012_v53 }
 0x153   : > { %v2658_v56 = vpop.permute.xlu2 %888  ;;  %v1163_v55 = vpop.permute.xlu1 %1162 }
 0x154   : > { %v1164_v12 = vrot.slane %v1163_v55, 2  ;;  %v722_v34 = vpop.permute.xlu0 %721 }
 0x155   : > { %v723_v41 = vrot.slane %v722_v34, 6 }
 0x156   : > { %v1165_v57 = vsel %vm339_vm12, %v1163_v55, %v1164_v12 }
 0x157   : > { %v1167_v59 = vadd.f32 %v1165_v57, %v2623_v1  ;;  %v724_v38 = vsel %vm386_vm14, %v723_v41, %v722_v34 }
 0x15b   : > { %v2662_v63 = vpop.permute.xlu2 %1350  ;;  %v867_v0 = vpop.permute.xlu1 %866 }
 0x15c   : > { %v1174_v48 = vpop.permute.xlu0 %1173  ;;  %v868_v39 = vrot.slane %v867_v0, 6  ;;  %v1352_v41 = vrot.slane %v2662_v63, 6 }
 0x15d   : > { %v1175_v18 = vrot.slane %v1174_v48, 6 }
 0x15e   : > { %v869_v5 = vsel %vm362_vm13, %v868_v39, %v867_v0 }
 0x15f   : > { %v1176_v8 = vsel %vm362_vm13, %v1175_v18, %v1174_v48  ;;  %v871_v14 = vadd.f32 %v869_v5, %v2638_v25 }
 0x160   : > { %v1178_v9 = vadd.f32 %v1176_v8, %v1167_v59 }
 0x162   : > { %v2666_v10 = vadd.f32 %v1187_v7, %v1178_v9 }
 0x163   : > { %v2668_v52 = vpop.permute.xlu2 %1051  ;;  %v1329_v11 = vpop.permute.xlu1 %1328 }
 0x164   : > { %v1330_v13 = vrot.slane %v1329_v11, 2  ;;  %v878_v4 = vpop.permute.xlu0 %877  ;;  %v1053_v35 = vrot.slane %v2668_v52, 6 }
 0x165   : > { %v879_v44 = vrot.slane %v878_v4, 6 }
 0x166   : > { %v1331_v1 = vsel %vm339_vm12, %v1329_v11, %v1330_v13  ;;  %v1054_v5 = vsel %vm409_vm15, %v1053_v35, %v2668_v52  ;;  %vm1274_vm12 = vcmask 1006592  }
 0x167   : > { %v1333_v15 = vadd.f32 %v1331_v1, %v1322_v6  ;;  %v880_v50 = vsel %vm386_vm14, %v879_v44, %v878_v4 }
 0x168   : > { %v882_v34 = vadd.f32 %v880_v50, %v871_v14 }
 0x16b   : > { %v766_v17 = vpop.permute.xlu2 %765  ;;  %v2671_v36 = vpop.permute.xlu1 %1029 }
 0x16c   : > { %v1340_v19 = vpop.permute.xlu0 %1339  ;;  %v767_v42 = vrot.slane %v766_v17, 6 }
 0x16d   : > { %v1341_v20 = vrot.slane %v1340_v19, 6 }
 0x16e   : > { %v768_v57 = vsel %vm432_vm0, %v767_v42, %v766_v17  ;;  %v1031_v17 = vrot.slane %v2671_v36, 6 }
 0x16f   : > { %v1342_v26 = vsel %vm362_vm13, %v1341_v20, %v1340_v19 }
 0x170   : > { %v2674_v21 = vadd.f32 %v1342_v26, %v1333_v15 }
 0x173   : > { %v744_v23 = vpop.permute.xlu1 %743  ;;  %v621_v2 = vpop.permute.xlu2 %620 }
 0x174   : > { %v622_v24 = vrot.slane %v621_v2, 2  ;;  %v2676_v45 = vpop.permute.xlu0 %1040  ;;  %v745_v51 = vrot.slane %v744_v23, 6 }
 0x176   : > { %v624_v27 = vsel %vm623_vm3, %v621_v2, %v622_v24  ;;  %v746_v46 = vsel %vm409_vm15, %v745_v51, %v744_v23  ;;  %v1042_v23 = vrot.slane %v2676_v45, 6 }
 0x177   : > { %v2679_v58 = vadd.f32 %v624_v27, %v2456_v31  ;;  %v726_v31 = vadd.f32 %v724_v38, %v715_v49  ;;  %v890_v49 = vrot.slane %v2658_v56, 6  ;;  %v1032_v27 = vsel %vm386_vm14, %v1031_v17, %v2671_v36 }
 0x178   : > { %v1043_v38 = vsel %vm386_vm14, %v1042_v23, %v2676_v45 }
 0x179   : > { %v737_v47 = vadd.f32 %v735_v40, %v726_v31  ;;  %v891_v62 = vsel %vm386_vm14, %v890_v49, %v2658_v56  ;;  %v1034_v31 = vadd.f32 %v1032_v27, %v2656_v54 }
 0x17a   : > { %v893_v11 = vadd.f32 %v891_v62, %v882_v34 }
 0x17b   : > { %v2681_v29 = vpop.permute.xlu1 %1195  ;;  %v2685_v33 = vpop.permute.xlu2 %1217  ;;  %v748_v53 = vadd.f32 %v746_v46, %v737_v47  ;;  %v1045_v44 = vadd.f32 %v1043_v38, %v1034_v31 }
 0x17c   : > { %v755_v30 = vpop.permute.xlu0 %754  ;;  %v1219_v47 = vrot.slane %v2685_v33, 6 }
 0x17d   : > { %v756_v6 = vrot.slane %v755_v30, 6 }
 0x17f   : > { %v757_v28 = vsel %vm432_vm0, %v756_v6, %v755_v30  ;;  %v1197_v30 = vrot.slane %v2681_v29, 6  ;;  %v1353_v6 = vsel %vm362_vm13, %v1352_v41, %v2662_v63  ;;  %vm1440_vm13 = vcmask 998400  }
 0x180   : > { %v759_v55 = vadd.f32 %v757_v28, %v748_v53  ;;  %v1355_v50 = vadd.f32 %v1353_v6, %v2674_v21 }
 0x181   : > { %v1198_v36 = vsel %vm386_vm14, %v1197_v30, %v2681_v29 }
 0x182   : > { %v770_v9 = vadd.f32 %v768_v57, %v759_v55  ;;  %v1200_v49 = vadd.f32 %v1198_v36, %v2666_v10  ;;  %v1220_v10 = vsel %vm409_vm15, %v1219_v47, %v2685_v33 }
 0x183   : > { %v900_v32 = vpop.permute.xlu1 %899  ;;  %v922_v60 = vpop.permute.xlu2 %921 }
 0x184   : > { %v2683_v37 = vpop.permute.xlu0 %1206  ;;  %v901_v12 = vrot.slane %v900_v32, 6  ;;  %v923_v4 = vrot.slane %v922_v60, 6 }
 0x185   : > { %v1208_v51 = vrot.slane %v2683_v37, 6 }
 0x186   : > { %v902_v8 = vsel %vm409_vm15, %v901_v12, %v900_v32  ;;  %v924_v20 = vsel %vm432_vm0, %v923_v4, %v922_v60  ;;  %v1056_v12 = vadd.f32 %v1054_v5, %v1045_v44 }
 0x187   : > { %v904_v15 = vadd.f32 %v902_v8, %v893_v11  ;;  %v1209_v54 = vsel %vm386_vm14, %v1208_v51, %v2683_v37 }
 0x188   : > { %v1211_v55 = vadd.f32 %v1209_v54, %v1200_v49 }
 0x18a   : > { %v1222_v8 = vadd.f32 %v1220_v10, %v1211_v55 }
 0x18b   : > { %v2687_v61 = vpop.permute.xlu1 %1361  ;;  %v2704_v59 = vpop.permute.xlu2 %1383 }
 0x18c   : > { %v911_v16 = vpop.permute.xlu0 %910  ;;  %v1363_v39 = vrot.slane %v2687_v61, 6  ;;  %v1385_v34 = vrot.slane %v2704_v59, 6 }
 0x18d   : > { %v912_v0 = vrot.slane %v911_v16, 6 }
 0x18e   : > { %v1364_v63 = vsel %vm386_vm14, %v1363_v39, %v2687_v61 }
 0x18f   : > { %v913_v13 = vsel %vm409_vm15, %v912_v0, %v911_v16  ;;  %v1366_v57 = vadd.f32 %v1364_v63, %v1355_v50 }
 0x190   : > { %v915_v56 = vadd.f32 %v913_v13, %v904_v15 }
 0x192   : > { %v926_v32 = vadd.f32 %v924_v20, %v915_v56 }
 0x193   : > { %v2693_v43 = vpop.permute.xlu1 %1062  ;;  %v2711_v19 = vpop.permute.xlu2 %1239 }
 0x194   : > { %v2696_v22 = vpop.permute.xlu0 %1372  ;;  %v1064_v40 = vrot.slane %v2693_v43, 6 }
 0x195   : > { %v1374_v45 = vrot.slane %v2696_v22, 6 }
 0x196   : > { %v1065_v53 = vsel %vm409_vm15, %v1064_v40, %v2693_v43  ;;  %v1241_v43 = vrot.slane %v2711_v19, 6 }
 0x197   : > { %v1375_v37 = vsel %vm386_vm14, %v1374_v45, %v2696_v22  ;;  %v1067_v62 = vadd.f32 %v1065_v53, %v1056_v12  ;;  %v1386_v22 = vsel %vm409_vm15, %v1385_v34, %v2704_v59  ;;  %v1445_v34 = vstv %s1763_s25 }
 0x198   : > { %v1377_v0 = vadd.f32 %v1375_v37, %v1366_v57  ;;  %v1242_v56 = vsel %vm432_vm0, %v1241_v43, %v2711_v19 }
 0x19a   : > { %v1388_v17 = vadd.f32 %v1386_v22, %v1377_v0 }
 0x19b   : > { %v779_v48 = vpop.permute.xlu1 %778  ;;  %v1251_v42 = vpop.permute.xlu2 %1250 }
 0x19c   : > { %v780_v18 = vrot.slane %v779_v48, 6  ;;  %v1074_v7 = vpop.permute.xlu0 %1073  ;;  %v1252_v20 = vrot.slane %v1251_v42, 6 }
 0x19d   : > { %v1075_v29 = vrot.slane %v1074_v7, 6 }
 0x19e   : > { %v782_v25 = vsel %vm781_vm4, %v780_v18, %v779_v48  ;;  %v1253_v30 = vsel %vm432_vm0, %v1252_v20, %v1251_v42 }
 0x19f   : > { %v784_v1 = vmul.f32 %v782_v25, %v770_v9  ;;  %v1076_v61 = vsel %vm432_vm0, %v1075_v29, %v1074_v7 }
 0x1a0   : > { %v1078_v9 = vadd.f32 %v1076_v61, %v1067_v62 }
 0x1a1   : > { %786 = vrot.lane.b32.xlu1 %v784_v1, %s2038_s20 }
 0x1a3   : > { %v1229_v26 = vpop.permute.xlu1 %1228  ;;  %v1417_v13 = vpop.permute.xlu2 %1416 }
 0x1a4   : > { %v933_v2 = vpop.permute.xlu0 %932  ;;  %v1230_v14 = vrot.slane %v1229_v26, 6 }
 0x1a5   : > { %v934_v24 = vrot.slane %v933_v2, 6 }
 0x1a6   : > { %v1231_v48 = vsel %vm409_vm15, %v1230_v14, %v1229_v26 }
 0x1a7   : > { %v935_v16 = vsel %vm432_vm0, %v934_v24, %v933_v2  ;;  %v1233_v7 = vadd.f32 %v1231_v48, %v1222_v8  ;;  %v1418_v2 = vrot.slane %v1417_v13, 6 }
 0x1a8   : > { %v937_v60 = vadd.f32 %v935_v16, %v926_v32 }
 0x1a9   : > { %v1244_v27 = vadd.f32 %v1242_v56, %v1233_v7  ;;  %v1419_v41 = vsel %vm432_vm0, %v1418_v2, %v1417_v13 }
 0x1aa   : > { %939 = vrot.lane.b32.xlu2 %v937_v60, %s2039_s22  ;;  %s1964_s22 = scalar_lea.hbm %s2802_s3, 16 }
 0x1ab   : > { %v1085_v46 = vpop.permute.xlu1 %1084  ;;  %v1255_v38 = vadd.f32 %v1253_v30, %v1244_v27  ;;  %p1966_p2 = scmp.lt.s32.totalorder %s1964_s22, %s1960_s17 }
 0x1ac   : > { %v1395_v28 = vpop.permute.xlu0 %1394  ;;  %v1086_v52 = vrot.slane %v1085_v46, 6 }
 0x1ad   : > { %v1396_v21 = vrot.slane %v1395_v28, 6  ;;  %p1967_p10 = por %p1966_p2, %p1965_p9 }
 0x1ae   : > { %v1087_v18 = vsel %vm432_vm0, %v1086_v52, %v1085_v46 }
 0x1af   : > { %v1089_v4 = vadd.f32 %v1087_v18, %v1078_v9  ;;  %v1397_v1 = vsel %vm409_vm15, %v1396_v21, %v1395_v28  ;;  %p1968_p11 = pnand %p1967_p10, %p1963_p8 }
 0x1b0   : > { %v1399_v24 = vadd.f32 %v1397_v1, %v1388_v17 }
 0x1b3   : > { %v1098_v11 = vpop.permute.xlu1 %1097 }
 0x1b4   : > { %v1099_v33 = vrot.slane %v1098_v11, 6  ;;  %v1406_v25 = vpop.permute.xlu0 %1405 }
 0x1b5   : > { %v1407_v15 = vrot.slane %v1406_v25, 6 }
 0x1b6   : > { %v1101_v26 = vsel %vm1100_vm5, %v1099_v33, %v1098_v11 }
 0x1b7   : > { %v1103_v23 = vmul.f32 %v1101_v26, %v1089_v4  ;;  %v1408_v59 = vsel %vm432_vm0, %v1407_v15, %v1406_v25 }
 0x1b8   : > { %v1410_v32 = vadd.f32 %v1408_v59, %v1399_v24 }
 0x1b9   : > { %1105 = vrot.lane.b32.xlu0 %v1103_v23, %s2040_s4 }
 0x1ba   : > { %v1421_v60 = vadd.f32 %v1419_v41, %v1410_v32 }
 0x1bb   : > { %v1264_v16 = vpop.permute.xlu1 %1263 }
 0x1bc   : > { %v1265_v35 = vrot.slane %v1264_v16, 6  ;;  %v1430_v19 = vpop.permute.xlu0 %1429 }
 0x1bd   : > { %v1431_v51 = vrot.slane %v1430_v19, 6 }
 0x1be   : > { %v1267_v31 = vsel %vm1266_vm6, %v1265_v35, %v1264_v16 }
 0x1bf   : > { %v1269_v39 = vmul.f32 %v1267_v31, %v1255_v38  ;;  %v1433_v36 = vsel %vm1432_vm8, %v1431_v51, %v1430_v19 }
 0x1c0   : > { %v1435_v40 = vmul.f32 %v1433_v36, %v1421_v60 }
 0x1c1   : > { %1271 = vrot.lane.b32.xlu1 %v1269_v39, %s2041_s24 }
 0x1c2   : > { %1437 = vrot.lane.b32.xlu2 %v1435_v40, %s2042_s21 }
 0x204   : > { %v940_v45 = vpop.permute.xlu2 %939 }
 0x205   : > { %v941_v54 = vrot.slane %v940_v45, 2 }
 0x207   : > { %v943_v28 = vsel %vm942_vm10, %v940_v45, %v941_v54 }
 0x213   : > { %v787_v6 = vpop.permute.xlu1 %786 }
 0x214   : > { %v788_v44 = vrot.slane %v787_v6, 2 }
 0x216   : > { %v790_v5 = vsel %vm789_vm9, %v787_v6, %v788_v44 }
 0x217   : > { %v792_v29 = vadd.f32 %v790_v5, %v2679_v58 }
 0x219   : > { %v945_v63 = vadd.f32 %v943_v28, %v792_v29 }
 0x21c   : > { %v1438_v42 = vpop.permute.xlu2 %1437 }
 0x21d   : > { %v1439_v53 = vrot.slane %v1438_v42, 2 }
 0x21f   : > { %v1441_v37 = vsel %vm1440_vm13, %v1438_v42, %v1439_v53 }
 0x22b   : > { %v1106_v46 = vpop.permute.xlu0 %1105 }
 0x22c   : > { %v1107_v47 = vrot.slane %v1106_v46, 2 }
 0x22e   : > { %v1109_v49 = vsel %vm1108_vm11, %v1106_v46, %v1107_v47 }
 0x22f   : > { %v1111_v52 = vadd.f32 %v1109_v49, %v945_v63 }
 0x233   : > { %v1272_v50 = vpop.permute.xlu1 %1271 }
 0x234   : > { %v1273_v14 = vrot.slane %v1272_v50, 2 }
 0x236   : > { %v1275_v55 = vsel %vm1274_vm12, %v1272_v50, %v1273_v14 }
 0x237   : > { %v1277_v12 = vadd.f32 %v1275_v55, %v1111_v52 }
 0x239   : > { %v1443_v10 = vadd.f32 %v1441_v37, %v1277_v12 }
 0x23b   : > { %v1446_v57 = vadd.f32 %v1445_v34, %v1443_v10 }
 0x23d   : > { %v1764_v61 = vmul.f32 -1.442695, %v1446_v57 }
 0x23f   : > { %1863 = vpow2.f32 %v1764_v61 }
 0x245   : > { %v1864_v58 = vpop.eup %1863 }
 0x246   : > { %v1450_v62 = vadd.f32 1.0, %v1864_v58 }
 0x248   : > { %1865 = vrcp.f32 %v1450_v62  ;;  %v1462_v48 = vand.u32 2147483648, %v1450_v62  ;;  %v1460_v8 = vand.u32 2147483647, %v1450_v62  ;;  %vm1456_vm15 = vweird.f32 %v1450_v62 }
 0x24a   : > { %v1463_v9 = vor.u32 1.1754944e-38, %v1462_v48  ;;  %vm1461_vm1 = vcmp.eq.f32.partialorder %v1460_v8, 8.507059e+37 }
 0x24e   : > { %v1866_v21 = vpop.eup %1865 }
 0x24f   : > { %v1452_v0 = vmul.f32 %v1866_v21, %v1450_v62  ;;  %vm1457_vm14 = vweird.f32 %v1866_v21 }
 0x250   : > { %vm1458_vm0 = vmor %vm1456_vm15, %vm1457_vm14 }
 0x251   : > { %v1453_v43 = vsub.f32 1.0, %v1452_v0 }
 0x253   : > { %v1454_v18 = vmul.f32 %v1866_v21, %v1453_v43 }
 0x255   : > { %v1455_v22 = vadd.f32 %v1866_v21, %v1454_v18 }
 0x257   : > { %v1459_v11 = vsel %vm1458_vm0, %v1866_v21, %v1455_v22 }
 0x258   : > { %v1464_v33 = vsel %vm1461_vm1, %v1463_v9, %v1459_v11 }
 0x259   : > { %v1469_v25 = vperm.slane %v1464_v33, 4  ;;  %v1467_v13 = vperm.slane %v1464_v33, 0  ;;  %v1468_v7 = vperm.slane %v1464_v33, 2 }
 0x25b   : > { %v1475_v4 = vperm.slane %v1469_v25, 0  ;;  %v1474_v1 = vperm.slane %v1468_v7, 0  ;;  %v1473_v15 = vperm.slane %v1467_v13, 0 }
 0x25d   : > { %1483 = vrot.lane.b32.xlu1 %v1475_v4, %s2043_s28  ;;  %v1479_v17 = vrot.slane %v1474_v1, 4 }
 0x25f   : > { %v1480_v56 = vsel %vm225_vm7, %v1473_v15, %v1479_v17 }
 0x260   : > { %1481 = vrot.lane.b32.xlu0 %v1480_v56, %s2043_s28 }
 0x2cf   : > { %v1484_v20 = vpop.permute.xlu1 %1483 }
 0x2d0   : > { %v1486_v23 = vrot.slane %v1484_v20, 4 }
 0x2d2   : > { %v1482_v26 = vpop.permute.xlu0 %1481 }
 0x2d3   : > { %v1485_v59 = vrot.slane %v1482_v26, 4 }
 0x2d5   : > { %v1487_v2 = vsel %vm225_vm7, %v1485_v59, %v1486_v23 }
 0x2d6   : > { %v1489_v24 = vsel %vm1488_vm2, %v1482_v26, %v1487_v2 }
 0x2d7   : > { %v1491_v27 = vmul.f32 %v1489_v24, %v2178_v3 }
 0x2d9   : > { %1492 = vst [vmem:[%s217_s10] sm:$0xff] %v1491_v27 }
 0x2da   : > { %1971 = shalt.err (!%p1968_p11)
}
 0x2db   : > { %1782 = dma.vmem_to_hbm [thread:$0]  (%p2130_p3), %s1508_s27, 128, %s1510_s18, %s1494_s16  }
 0x2dc PF: > { %s1521_s8 = sand.u32 1, %s2006_s12   ;;  %p2808_p12 = scmp.ge.s32.totalorder %s2018_s15, 2 }
 0x2dd   : > { %s1522_s21 = scalar_lea.sflag [#allocation5], %s1521_s8 }
 0x2de   : > { %p1796_p13 = pnand %p2808_p12, %p2099_p6 }
 0x2e0   : > { %p1797_p0 = pneg %p1796_p13 }
 0x2e2   : > { %2001 = dma.done.wait (%p1797_p0), %s1522_s21, 128  }
 0x2e3   : > { %2003 = vsyncadd (%p1797_p0), %s1522_s21, 4294967168  ;;  %p18_p5 = scmp.ge.s32.totalorder %s2120_s30, 4   ;;  %s2809_s12 = smov %s2010_s13 }
 0x2e4   : > { %s2810_s13 = smov %s2014_s14  ;;  %s2811_s14 = smov %s2136_s7 }
 0x2e5   : > { %s2812_s15 = smov %s2120_s30  ;;  %20 = sbr.rel (!%p18_p5) target bundleno = 7 (0x7), region = 94 }
 0x2ea   :  { %1528 = vsyncpa [#allocation4], 1 }
 0x2eb   :  { %1530 = vsyncpa [#allocation4 + $0x1], 1 }
 0x2ec   :  { %1531 = vsyncpa [#allocation9], 1 }
 0x2ed   :  { %1533 = vsyncpa [#allocation9 + $0x1], 1 }
 0x2ee   :  { %1534 = vsyncpa [#allocation5], 1 }
 0x2ef   :  { %1536 = vsyncpa [#allocation5 + $0x1], 1 }
 0x2f0   :  { %1537 = vsyncpa [#allocation6], 1 }
 0x2f1   :  { %1539 = vsyncpa [#allocation6 + $0x1], 1 }

</bundles_post_ra>
